<compile_context>
chip_gen: v7x
topology: tpu7x:2x2x1
jax: 0.10.0
libtpu: 0.0.40
codegen_flags: <defaults>
</compile_context>

<pallas_src>
import functools
import math

import jax
import jax.numpy as jnp
from jax.experimental import pallas as pl
from jax.experimental.pallas import tpu as pltpu


def _choose_tiling(L):
    """Pick (padded length Lp, key-chunk TK, num_chunks).

    L is padded up to a multiple of TK so arbitrary L (e.g. production 5244)
    gets fixed-size key chunks plus a masked tail instead of degenerating to a
    full (L, L) materialization."""
    if L <= 256:
        Lp = pl.cdiv(L, 128) * 128
        return Lp, Lp, 1
    TK = 256  # keeps the (TK, Lp) f32 logit slab small enough for v7x VMEM
    Lp = pl.cdiv(L, TK) * TK
    return Lp, TK, Lp // TK


def _mlp_nl_kernel(x_ref, wqkv_ref, bqkv_ref, wz_ref, bz_ref,
                   wfc1_ref, wfc2_ref, bfc_ref, out_ref,
                   proj_sc, m_sc, l_sc, acc_sc,
                   *, Ci, TK, num_chunks, L_true, Lp):
    f32 = jnp.float32
    x = x_ref[0]                                            # (C, Lp) f32

    # Fused g/theta/phi 1x1 convs: one (3Ci, C) @ (C, Lp) MXU pass written
    # straight into a single scratch slab (no per-branch copies / transposes).
    proj_sc[...] = (jnp.dot(wqkv_ref[...], x, preferred_element_type=f32)
                    + bqkv_ref[...])                        # (3Ci, Lp)

    padded = Lp != L_true                                   # static

    def process_chunk(j0, first):
        g_blk = proj_sc[0:Ci, pl.ds(j0, TK)]                # (Ci, TK)
        ph_blk = proj_sc[2 * Ci:3 * Ci, pl.ds(j0, TK)]      # (Ci, TK)
        # Logits for this key block: fT[j, i] = phi_j . theta_i.  Expressed as
        # a TN dot_general so no whole-slab phi transpose / (L, Ci) scratch.
        fT = jax.lax.dot_general(
            ph_blk, proj_sc[Ci:2 * Ci, :],
            dimension_numbers=(((0,), (0,)), ((), ())),
            preferred_element_type=f32)                     # (TK, Lp)
        if padded:
            # Mask padded KEY rows to -inf so they contribute 0 after exp.
            key_idx = j0 + jax.lax.broadcasted_iota(jnp.int32, (TK, Lp), 0)
            fT = jnp.where(key_idx < L_true, fT, -jnp.inf)
        blk_max = jnp.max(fT, axis=0, keepdims=True)        # (1, Lp)
        if first:
            # Chunk 0 initializes the online-softmax state: no alpha rescale.
            m_new = blk_max
            p = jnp.exp(fT - m_new)                         # (TK, Lp)
            l_sc[...] = jnp.sum(p, axis=0, keepdims=True)
            acc_sc[...] = jnp.dot(g_blk, p, preferred_element_type=f32)
        else:
            m_new = jnp.maximum(m_sc[...], blk_max)
            alpha = jnp.exp(m_sc[...] - m_new)              # (1, Lp)
            p = jnp.exp(fT - m_new)                         # (TK, Lp)
            l_sc[...] = alpha * l_sc[...] + jnp.sum(p, axis=0, keepdims=True)
            acc_sc[...] = alpha * acc_sc[...] + jnp.dot(
                g_blk, p, preferred_element_type=f32)       # (Ci, Lp)
        m_sc[...] = m_new

    process_chunk(0, first=True)
    if num_chunks > 1:
        if num_chunks <= 3:
            for s in range(1, num_chunks):                  # short: unroll
                process_chunk(s * TK, first=False)
        else:
            @pl.loop(1, num_chunks)
            def _(s):
                process_chunk(pl.multiple_of(s * TK, TK), first=False)

    # Deferred softmax normalization: one (1, Lp) reciprocal + (Ci, Lp) scale.
    y = acc_sc[...] * (1.0 / l_sc[...])                     # (Ci, Lp)

    # W_z 1x1 conv (inference-mode BatchNorm folded on host) + residual.
    wy = jnp.dot(wz_ref[...], y, preferred_element_type=f32) + bz_ref[...]
    z = wy + x                                              # (C, Lp)

    # x1 = per-channel mean over the TRUE L; x2 = per-channel max over true L.
    if padded:
        lane = jax.lax.broadcasted_iota(jnp.int32, z.shape, 1)
        valid = lane < L_true
        x1 = (jnp.sum(jnp.where(valid, z, 0.0), axis=-1, keepdims=True)
              / float(L_true))                              # (C, 1)
        x2 = jnp.max(jnp.where(valid, z, -jnp.inf), axis=-1, keepdims=True)
    else:
        x1 = jnp.mean(z, axis=-1, keepdims=True)            # (C, 1)
        x2 = jnp.max(z, axis=-1, keepdims=True)              # (C, 1)

    # Linear(2C -> 1) applied to concat([x1, x2]).
    val = (jnp.sum(wfc1_ref[...] * x1 + wfc2_ref[...] * x2,
                   axis=0, keepdims=True) + bfc_ref[...])   # (1, 1)
    out_ref[...] = jnp.broadcast_to(val[None, :, :], out_ref.shape)


def _make_mlp_call(N, C, L):
    Ci = C // 2
    Lp, TK, num_chunks = _choose_tiling(L)
    kernel = functools.partial(_mlp_nl_kernel, Ci=Ci, TK=TK,
                               num_chunks=num_chunks, L_true=L, Lp=Lp)

    def full_spec(shape):
        zeros = (0,) * len(shape)
        return pl.BlockSpec(shape, lambda n, _z=zeros: _z)

    grid_spec = pltpu.PrefetchScalarGridSpec(
        num_scalar_prefetch=0,
        grid=(N,),
        in_specs=[
            pl.BlockSpec((1, C, Lp), lambda n: (n, 0, 0)),   # pooled input
            full_spec((3 * Ci, C)), full_spec((3 * Ci, 1)),  # fused g/theta/phi
            full_spec((C, Ci)), full_spec((C, 1)),           # W_z (BN folded)
            full_spec((C, 1)), full_spec((C, 1)),            # final fc w halves
            full_spec((1, 1)),                               # final fc bias
        ],
        out_specs=pl.BlockSpec((1, 1, 128), lambda n: (n, 0, 0)),
        scratch_shapes=[
            pltpu.VMEM((3 * Ci, Lp), jnp.float32),  # fused g/theta/phi proj
            pltpu.VMEM((1, Lp), jnp.float32),       # online-softmax running max
            pltpu.VMEM((1, Lp), jnp.float32),       # online-softmax denominator
            pltpu.VMEM((Ci, Lp), jnp.float32),      # y accumulator
        ],
    )

    # VMEM budget: persistent scratch + double-buffered input block + in-loop
    # f32 temporaries (fT, p, z), with headroom; kept below v7x's 64 MiB.
    scratch_b = (3 * Ci * Lp + 2 * Lp + Ci * Lp) * 4
    io_b = 2 * C * Lp * 4 + 2 * 128 * 4
    temp_b = 2 * TK * Lp * 4 + C * Lp * 4
    vmem_limit = int(min(56 * 2**20,
                         max(16 * 2**20, 1.5 * (scratch_b + io_b + temp_b))))

    flops = N * (2 * (3 * Ci) * C * Lp      # fused projection
                 + 4 * Ci * Lp * Lp         # logits + attention-weighted sum
                 + 2 * C * Ci * Lp)         # W_z
    bytes_accessed = (N * C * Lp * 4                         # pooled input
                      + (3 * Ci * C + C * Ci) * 4            # weights
                      + (3 * Ci + 3 * C + 1) * 4             # biases + fc
                      + N * 128 * 4)                         # output
    return pl.pallas_call(
        kernel,
        out_shape=jax.ShapeDtypeStruct((N, 1, 128), jnp.float32),
        grid_spec=grid_spec,
        compiler_params=pltpu.CompilerParams(
            # Batch elements are fully independent -> shard the grid across
            # TensorCores on megacore chips (neutral on single-TC v5e/v6e).
            dimension_semantics=("parallel",),
            vmem_limit_bytes=vmem_limit),
        cost_estimate=pl.CostEstimate(
            flops=flops,
            transcendentals=N * Lp * Lp,
            bytes_accessed=bytes_accessed),
    )


def init_params(key, C):
    """Deterministic init matching init_param_fc + NLBlockND construction."""
    Ci = C // 2
    gain = math.sqrt(2.0 / (1.0 + 0.01 ** 2))   # kaiming gain, leaky_relu
    ks = jax.random.split(key, 5)

    def kaiming_conv(k, out_ch, in_ch):
        std = gain / math.sqrt(out_ch)          # mode='fan_out', 1x1 conv
        return jax.random.normal(k, (out_ch, in_ch), jnp.float32) * std

    eps = 1e-5
    params = dict(
        wg=kaiming_conv(ks[0], Ci, C), bg=jnp.zeros((Ci, 1), jnp.float32),
        wth=kaiming_conv(ks[1], Ci, C), bth=jnp.zeros((Ci, 1), jnp.float32),
        wph=kaiming_conv(ks[2], Ci, C), bph=jnp.zeros((Ci, 1), jnp.float32),
        wz=kaiming_conv(ks[3], C, Ci), bz=jnp.zeros((C, 1), jnp.float32),
        # BatchNorm2d after init_param_fc: weight=1, bias=0; eval-mode stats.
        bn_scale=jnp.full((C, 1), 1.0 / math.sqrt(1.0 + eps), jnp.float32),
        bn_shift=jnp.zeros((C, 1), jnp.float32),
        bfc=jnp.zeros((1, 1), jnp.float32),
    )
    # features = Linear(2C, 1): weight ~ N(0, 0.001), bias = 0.
    wfc = jax.random.normal(ks[4], (1, 2 * C), jnp.float32) * 0.001
    params['wfc1'] = wfc[0, :C].reshape(C, 1)
    params['wfc2'] = wfc[0, C:].reshape(C, 1)
    return params


def _pack_params(params):
    """Host-side fusion: stack g/theta/phi weights, fold the eval-mode
    BatchNorm (and the W_z bias) into W_z.  Everything stays f32 so the dots
    are portable (MXU still accumulates in f32 on TPU)."""
    wqkv = jnp.concatenate(
        [params['wg'], params['wth'], params['wph']], axis=0)
    bqkv = jnp.concatenate(
        [params['bg'], params['bth'], params['bph']], axis=0)
    wz_f = params['bn_scale'] * params['wz']
    bz_f = params['bn_scale'] * params['bz'] + params['bn_shift']
    return (wqkv, bqkv, wz_f, bz_f,
            params['wfc1'], params['wfc2'], params['bfc'])


def mlp_forward(x, params):
    # layout: x is (N, C, T, V) float32 (PyTorch NCHW).
    N, C, T, V = x.shape
    # Feat_maxpool = nn.MaxPool2d(2): kernel=2, stride=2, floor mode.
    # TODO(synk): the 2x2 pool stays as XLA glue; a stride-2 lane downsample
    # has no clean Mosaic lowering inside the kernel.
    H, W = T // 2, V // 2
    xp = x[:, :, :2 * H, :2 * W].reshape(N, C, H, 2, W, 2).max(axis=(3, 5))
    L = H * W
    x_flat = xp.reshape(N, C, L)
    Lp, _, _ = _choose_tiling(L)
    if Lp != L:
        # Pad the lane axis to a chunk multiple; padded keys/queries are
        # masked inside the kernel (softmax, mean, max all use the true L).
        x_flat = jnp.pad(x_flat, ((0, 0), (0, 0), (0, Lp - L)))
    out = _make_mlp_call(N, C, L)(x_flat, *_pack_params(params))
    return out[:, 0, 0], 0


def mlp_forward_ref(x, params):
    """Pure-JAX f32 reference for validation."""
    N, C, T, V = x.shape
    H, W = T // 2, V // 2
    xp = x[:, :, :2 * H, :2 * W].reshape(N, C, H, 2, W, 2).max(axis=(3, 5))
    xf = xp.reshape(N, C, H * W)
    P = jax.lax.Precision.HIGHEST
    g = jnp.einsum('oc,ncl->nol', params['wg'], xf, precision=P) + params['bg'][None]
    th = jnp.einsum('oc,ncl->nol', params['wth'], xf, precision=P) + params['bth'][None]
    ph = jnp.einsum('oc,ncl->nol', params['wph'], xf, precision=P) + params['bph'][None]
    f = jnp.einsum('nci,ncj->nij', th, ph, precision=P)
    p = jax.nn.softmax(f, axis=-1)
    y = jnp.einsum('nij,ncj->nic', p, g, precision=P)
    wy = jnp.einsum('oc,nic->noi', params['wz'], y, precision=P) + params['bz'][None]
    wy = wy * params['bn_scale'][None] + params['bn_shift'][None]
    z = wy + xf
    x1 = z.mean(axis=-1)
    x2 = z.max(axis=-1)
    out = (x1 @ params['wfc1'] + x2 @ params['wfc2'] + params['bfc'])[:, 0]
    return out, 0


if __name__ == "__main__":
    key = jax.random.PRNGKey(0)
    kx, kp = jax.random.split(key)
    # C is fixed at 192 by NLBlockND(in_channels=192); inchannel == C so the
    # adaptive average pool reduces to a per-channel mean.
    N, C, T, V = 2, 192, 16, 32
    x = jax.random.normal(kx, (N, C, T, V), dtype=jnp.float32)
    params = init_params(kp, C)

    out, clss = mlp_forward(x, params)
    out = jax.block_until_ready(out)

    out_ref, _ = mlp_forward_ref(x, params)
    assert out.shape == (N,)
    assert jnp.allclose(out, out_ref, rtol=5e-2, atol=5e-3), (out, out_ref)
    print("KERNEL_OK")
</pallas_src>

<mosaic_0001>
module attributes {stable_mosaic.version = 11 : i64} {
  func.func @_mlp_nl_kernel(%arg0: i32, %arg1: memref<1x192x128xf32, #tpu.memory_space<vmem>>, %arg2: memref<288x192xf32, #tpu.memory_space<vmem>>, %arg3: memref<288x1xf32, #tpu.memory_space<vmem>>, %arg4: memref<192x96xf32, #tpu.memory_space<vmem>>, %arg5: memref<192x1xf32, #tpu.memory_space<vmem>>, %arg6: memref<192x1xf32, #tpu.memory_space<vmem>>, %arg7: memref<192x1xf32, #tpu.memory_space<vmem>>, %arg8: memref<1x1xf32, #tpu.memory_space<vmem>>, %arg9: memref<1x1x128xf32, #tpu.memory_space<vmem>>, %arg10: memref<288x128xf32, #tpu.memory_space<vmem>>, %arg11: memref<1x128xf32, #tpu.memory_space<vmem>>, %arg12: memref<1x128xf32, #tpu.memory_space<vmem>>, %arg13: memref<96x128xf32, #tpu.memory_space<vmem>>) attributes {dimension_semantics = [#tpu.dimension_semantics<parallel>], iteration_bounds = array<i64: 2>, scalar_prefetch = 0 : i64, scratch_operands = 4 : i64, tpu.core_type = #tpu.core_type<tc>, window_params = [{transform_indices = @transform_0, window_bounds = array<i64: 1, 192, 128>}, {pipeline_mode = #tpu.pipeline_mode<synchronous>, transform_indices = @transform_1, window_bounds = array<i64: 288, 192>}, {pipeline_mode = #tpu.pipeline_mode<synchronous>, transform_indices = @transform_2, window_bounds = array<i64: 288, 1>}, {pipeline_mode = #tpu.pipeline_mode<synchronous>, transform_indices = @transform_3, window_bounds = array<i64: 192, 96>}, {pipeline_mode = #tpu.pipeline_mode<synchronous>, transform_indices = @transform_4, window_bounds = array<i64: 192, 1>}, {pipeline_mode = #tpu.pipeline_mode<synchronous>, transform_indices = @transform_5, window_bounds = array<i64: 192, 1>}, {pipeline_mode = #tpu.pipeline_mode<synchronous>, transform_indices = @transform_6, window_bounds = array<i64: 192, 1>}, {pipeline_mode = #tpu.pipeline_mode<synchronous>, transform_indices = @transform_7, window_bounds = array<i64: 1, 1>}, {transform_indices = @transform_8, window_bounds = array<i64: 1, 1, 128>}]} {
    %c0 = arith.constant 0 : index
    %c0_0 = arith.constant 0 : index
    %c0_1 = arith.constant 0 : index
    %0 = vector.load %arg1[%c0, %c0_0, %c0_1] : memref<1x192x128xf32, #tpu.memory_space<vmem>>, vector<1x192x128xf32>
    %1 = vector.shape_cast %0 : vector<1x192x128xf32> to vector<192x128xf32>
    %c0_2 = arith.constant 0 : index
    %c0_3 = arith.constant 0 : index
    %2 = vector.load %arg2[%c0_2, %c0_3] : memref<288x192xf32, #tpu.memory_space<vmem>>, vector<288x192xf32>
    %cst = arith.constant dense<0.000000e+00> : vector<288x128xf32>
    %3 = tpu.matmul %2, %1, %cst {dimension_numbers = #tpu.dot_dimension_numbers<[1], [0], [0], [1], [0, 0, 1, 1], [], []>} : vector<288x192xf32>, vector<192x128xf32>, vector<288x128xf32> -> vector<288x128xf32>
    %c0_4 = arith.constant 0 : index
    %c0_5 = arith.constant 0 : index
    %4 = vector.load %arg3[%c0_4, %c0_5] : memref<288x1xf32, #tpu.memory_space<vmem>>, vector<288x1xf32>
    %5 = vector.broadcast %4 : vector<288x1xf32> to vector<288x128xf32>
    %6 = arith.addf %3, %5 : vector<288x128xf32>
    %c0_6 = arith.constant 0 : index
    %c0_7 = arith.constant 0 : index
    %7 = vector.load %arg10[%c0_6, %c0_7] : memref<288x128xf32, #tpu.memory_space<vmem>>, vector<288x128xf32>
    tpu.vector_store %arg10[%c0_6, %c0_7], %6 {strides = array<i32>} : memref<288x128xf32, #tpu.memory_space<vmem>>, vector<288x128xf32>,
    %c0_8 = arith.constant 0 : index
    %c0_9 = arith.constant 0 : index
    %8 = vector.load %arg10[%c0_8, %c0_9] : memref<288x128xf32, #tpu.memory_space<vmem>>, vector<96x128xf32>
    %c192 = arith.constant 192 : index
    %c0_10 = arith.constant 0 : index
    %9 = vector.load %arg10[%c192, %c0_10] : memref<288x128xf32, #tpu.memory_space<vmem>>, vector<96x128xf32>
    %c96 = arith.constant 96 : index
    %c0_11 = arith.constant 0 : index
    %10 = vector.load %arg10[%c96, %c0_11] : memref<288x128xf32, #tpu.memory_space<vmem>>, vector<96x128xf32>
    %cst_12 = arith.constant dense<0.000000e+00> : vector<128x128xf32>
    %11 = tpu.matmul %9, %10, %cst_12 {dimension_numbers = #tpu.dot_dimension_numbers<[0], [0], [1], [1], [0, 1, 1, 1], [], []>} : vector<96x128xf32>, vector<96x128xf32>, vector<128x128xf32> -> vector<128x128xf32>
    %cst_13 = arith.constant dense<0xFF800000> : vector<128xf32>
    %12 = vector.multi_reduction <maximumf>, %11, %cst_13 [0] : vector<128x128xf32> to vector<128xf32>
    %13 = vector.shape_cast %12 : vector<128xf32> to vector<1x128xf32>
    %14 = vector.broadcast %13 : vector<1x128xf32> to vector<128x128xf32>
    %15 = arith.subf %11, %14 : vector<128x128xf32>
    %16 = math.exp %15 : vector<128x128xf32>
    %cst_14 = arith.constant dense<0.000000e+00> : vector<128xf32>
    %17 = vector.multi_reduction <add>, %16, %cst_14 [0] : vector<128x128xf32> to vector<128xf32>
    %18 = vector.shape_cast %17 : vector<128xf32> to vector<1x128xf32>
    %c0_15 = arith.constant 0 : index
    %c0_16 = arith.constant 0 : index
    %19 = vector.load %arg12[%c0_15, %c0_16] : memref<1x128xf32, #tpu.memory_space<vmem>>, vector<1x128xf32>
    tpu.vector_store %arg12[%c0_15, %c0_16], %18 {strides = array<i32>} : memref<1x128xf32, #tpu.memory_space<vmem>>, vector<1x128xf32>,
    %cst_17 = arith.constant dense<0.000000e+00> : vector<96x128xf32>
    %20 = tpu.matmul %8, %16, %cst_17 {dimension_numbers = #tpu.dot_dimension_numbers<[1], [0], [0], [1], [0, 0, 1, 1], [], []>} : vector<96x128xf32>, vector<128x128xf32>, vector<96x128xf32> -> vector<96x128xf32>
    %c0_18 = arith.constant 0 : index
    %c0_19 = arith.constant 0 : index
    %21 = vector.load %arg13[%c0_18, %c0_19] : memref<96x128xf32, #tpu.memory_space<vmem>>, vector<96x128xf32>
    tpu.vector_store %arg13[%c0_18, %c0_19], %20 {strides = array<i32>} : memref<96x128xf32, #tpu.memory_space<vmem>>, vector<96x128xf32>,
    %c0_20 = arith.constant 0 : index
    %c0_21 = arith.constant 0 : index
    %22 = vector.load %arg11[%c0_20, %c0_21] : memref<1x128xf32, #tpu.memory_space<vmem>>, vector<1x128xf32>
    tpu.vector_store %arg11[%c0_20, %c0_21], %13 {strides = array<i32>} : memref<1x128xf32, #tpu.memory_space<vmem>>, vector<1x128xf32>,
    %c0_22 = arith.constant 0 : index
    %c0_23 = arith.constant 0 : index
    %23 = vector.load %arg13[%c0_22, %c0_23] : memref<96x128xf32, #tpu.memory_space<vmem>>, vector<96x128xf32>
    %c0_24 = arith.constant 0 : index
    %c0_25 = arith.constant 0 : index
    %24 = vector.load %arg12[%c0_24, %c0_25] : memref<1x128xf32, #tpu.memory_space<vmem>>, vector<1x128xf32>
    %cst_26 = arith.constant 1.000000e+00 : f32
    %25 = vector.broadcast %cst_26 : f32 to vector<1x128xf32>
    %26 = arith.divf %25, %24 : vector<1x128xf32>
    %27 = vector.broadcast %26 : vector<1x128xf32> to vector<96x128xf32>
    %28 = arith.mulf %23, %27 : vector<96x128xf32>
    %c0_27 = arith.constant 0 : index
    %c0_28 = arith.constant 0 : index
    %29 = vector.load %arg4[%c0_27, %c0_28] : memref<192x96xf32, #tpu.memory_space<vmem>>, vector<192x96xf32>
    %cst_29 = arith.constant dense<0.000000e+00> : vector<192x128xf32>
    %30 = tpu.matmul %29, %28, %cst_29 {dimension_numbers = #tpu.dot_dimension_numbers<[1], [0], [0], [1], [0, 0, 1, 1], [], []>} : vector<192x96xf32>, vector<96x128xf32>, vector<192x128xf32> -> vector<192x128xf32>
    %c0_30 = arith.constant 0 : index
    %c0_31 = arith.constant 0 : index
    %31 = vector.load %arg5[%c0_30, %c0_31] : memref<192x1xf32, #tpu.memory_space<vmem>>, vector<192x1xf32>
    %32 = vector.broadcast %31 : vector<192x1xf32> to vector<192x128xf32>
    %33 = arith.addf %30, %32 : vector<192x128xf32>
    %34 = arith.addf %33, %1 : vector<192x128xf32>
    %cst_32 = arith.constant dense<0.000000e+00> : vector<192xf32>
    %35 = vector.multi_reduction <add>, %34, %cst_32 [1] : vector<192x128xf32> to vector<192xf32>
    %36 = vector.shape_cast %35 : vector<192xf32> to vector<192x1xf32>
    %cst_33 = arith.constant 1.280000e+02 : f32
    %37 = vector.broadcast %cst_33 : f32 to vector<192x1xf32>
    %38 = arith.divf %36, %37 : vector<192x1xf32>
    %cst_34 = arith.constant dense<0xFF800000> : vector<192xf32>
    %39 = vector.multi_reduction <maximumf>, %34, %cst_34 [1] : vector<192x128xf32> to vector<192xf32>
    %40 = vector.shape_cast %39 : vector<192xf32> to vector<192x1xf32>
    %c0_35 = arith.constant 0 : index
    %c0_36 = arith.constant 0 : index
    %41 = vector.load %arg6[%c0_35, %c0_36] : memref<192x1xf32, #tpu.memory_space<vmem>>, vector<192x1xf32>
    %42 = arith.mulf %41, %38 : vector<192x1xf32>
    %c0_37 = arith.constant 0 : index
    %c0_38 = arith.constant 0 : index
    %43 = vector.load %arg7[%c0_37, %c0_38] : memref<192x1xf32, #tpu.memory_space<vmem>>, vector<192x1xf32>
    %44 = arith.mulf %43, %40 : vector<192x1xf32>
    %45 = arith.addf %42, %44 : vector<192x1xf32>
    %cst_39 = arith.constant dense<0.000000e+00> : vector<1xf32>
    %46 = vector.multi_reduction <add>, %45, %cst_39 [0] : vector<192x1xf32> to vector<1xf32>
    %47 = vector.shape_cast %46 : vector<1xf32> to vector<1x1xf32>
    %c0_40 = arith.constant 0 : index
    %c0_41 = arith.constant 0 : index
    %48 = vector.load %arg8[%c0_40, %c0_41] : memref<1x1xf32, #tpu.memory_space<vmem>>, vector<1x1xf32>
    %49 = arith.addf %47, %48 : vector<1x1xf32>
    %50 = vector.shape_cast %49 : vector<1x1xf32> to vector<1x1x1xf32>
    %51 = vector.shape_cast %50 : vector<1x1x1xf32> to vector<1x1x1xf32>
    %52 = vector.broadcast %51 : vector<1x1x1xf32> to vector<1x1x128xf32>
    %c0_42 = arith.constant 0 : index
    %c0_43 = arith.constant 0 : index
    %c0_44 = arith.constant 0 : index
    %53 = vector.load %arg9[%c0_42, %c0_43, %c0_44] : memref<1x1x128xf32, #tpu.memory_space<vmem>>, vector<1x1x128xf32>
    tpu.vector_store %arg9[%c0_42, %c0_43, %c0_44], %52 {strides = array<i32>} : memref<1x1x128xf32, #tpu.memory_space<vmem>>, vector<1x1x128xf32>,
    return
  }
  func.func @transform_0(%arg0: i32) -> (i32, i32, i32) {
    %c0_i32 = arith.constant 0 : i32
    %c0_i32_0 = arith.constant 0 : i32
    %c0_i32_1 = arith.constant 0 : i32
    return %arg0, %c0_i32, %c0_i32_0 : i32, i32, i32
  }
  func.func @transform_1(%arg0: i32) -> (i32, i32) {
    %c0_i32 = arith.constant 0 : i32
    %c0_i32_0 = arith.constant 0 : i32
    %c0_i32_1 = arith.constant 0 : i32
    return %c0_i32, %c0_i32_0 : i32, i32
  }
  func.func @transform_2(%arg0: i32) -> (i32, i32) {
    %c0_i32 = arith.constant 0 : i32
    %c0_i32_0 = arith.constant 0 : i32
    %c0_i32_1 = arith.constant 0 : i32
    return %c0_i32, %c0_i32_0 : i32, i32
  }
  func.func @transform_3(%arg0: i32) -> (i32, i32) {
    %c0_i32 = arith.constant 0 : i32
    %c0_i32_0 = arith.constant 0 : i32
    %c0_i32_1 = arith.constant 0 : i32
    return %c0_i32, %c0_i32_0 : i32, i32
  }
  func.func @transform_4(%arg0: i32) -> (i32, i32) {
    %c0_i32 = arith.constant 0 : i32
    %c0_i32_0 = arith.constant 0 : i32
    %c0_i32_1 = arith.constant 0 : i32
    return %c0_i32, %c0_i32_0 : i32, i32
  }
  func.func @transform_5(%arg0: i32) -> (i32, i32) {
    %c0_i32 = arith.constant 0 : i32
    %c0_i32_0 = arith.constant 0 : i32
    %c0_i32_1 = arith.constant 0 : i32
    return %c0_i32, %c0_i32_0 : i32, i32
  }
  func.func @transform_6(%arg0: i32) -> (i32, i32) {
    %c0_i32 = arith.constant 0 : i32
    %c0_i32_0 = arith.constant 0 : i32
    %c0_i32_1 = arith.constant 0 : i32
    return %c0_i32, %c0_i32_0 : i32, i32
  }
  func.func @transform_7(%arg0: i32) -> (i32, i32) {
    %c0_i32 = arith.constant 0 : i32
    %c0_i32_0 = arith.constant 0 : i32
    %c0_i32_1 = arith.constant 0 : i32
    return %c0_i32, %c0_i32_0 : i32, i32
  }
  func.func @transform_8(%arg0: i32) -> (i32, i32, i32) {
    %c0_i32 = arith.constant 0 : i32
    %c0_i32_0 = arith.constant 0 : i32
    %c0_i32_1 = arith.constant 0 : i32
    return %arg0, %c0_i32, %c0_i32_0 : i32, i32, i32
  }
}

</mosaic_0001>

<bundles_post_ra>
// kernel: tpu_custom_call.1
= control target key start
LH: loop header
LB: loop body
LE: loop exit
PB: predicated region body
PF: predicated region fallthrough
CT: control target
= control target key end

     0   :  { %s4126_s0 = inlined_call_operand.hbm [shape: f32[2,192,128], index: 0, kind: input, shape index: {}]   ;;  %s4127_s1 = inlined_call_operand.vmem [shape: f32[288,192], index: 1, kind: input, shape index: {}]   ;;  %s4128_s2 = inlined_call_operand.vmem [shape: f32[288,1], index: 2, kind: input, shape index: {}]   ;;  %s4129_s3 = inlined_call_operand.vmem [shape: f32[192,96], index: 3, kind: input, shape index: {}]   ;;  %s4130_s4 = inlined_call_operand.vmem [shape: f32[192,1], index: 4, kind: input, shape index: {}]   ;;  %s4131_s5 = inlined_call_operand.vmem [shape: f32[192,1], index: 5, kind: input, shape index: {}]   ;;  %s4132_s6 = inlined_call_operand.vmem [shape: f32[192,1], index: 6, kind: input, shape index: {}]   ;;  %s4133_s7 = inlined_call_operand.<no memory space> [shape: f32[1,1], index: 7, kind: input, shape index: {}]   ;;  %s4134_s8 = inlined_call_operand.hbm [shape: f32[2,1,128], index: 8, kind: output, shape index: {}]  }
   0x1   :  { %v13_v0 = vstv %s4133_s7 }
   0x2   :  { %14 = vst [vmem:[#allocation6] sm:$0x1] %v13_v0 }
   0x3   :  { %15 = vsyncpa [#allocation8], 0 }
   0x4   :  { %17 = vsyncpa [#allocation8 + $0x1], 0 }
   0x5   :  { %18 = vsyncpa [#allocation9], 0 }
   0x6   :  { %20 = vsyncpa [#allocation9 + $0x1], 0  ;;  %s3098_s29 = smov 0   ;;  %s3100_s30 = smov 0  }
   0x7   :  { %s3102_s9 = smov 0   ;;  %s3104_s10 = smov 0  }
   0x8 LB: > { %s3119_s7 = sadd.s32 4294967295, %s3042_s10   ;;  %s2382_s11 = sadd.s32 4294967294, %s3042_s10   ;;  %s3042_s10 = sphi %s3104_s10, %s4146_s10   ;;  %s3038_s9 = sphi %s3102_s9, %s4145_s9   ;;  %s3034_s30 = sphi %s3100_s30, %s4144_s30   ;;  %s3030_s29 = sphi %s3098_s29, %s4143_s29  }
   0x9   : > { %s3123_s12 = sadd.s32 1, %s3042_s10   ;;  %s33_s13 = sadd.s32 1, %s3038_s9 }
   0xa   : > { %s30_s14 = ssub.s32 %s3042_s10, %s3123_s12  ;;  %p40_p0 = scmp.ne.s32.totalorder %s3038_s9, %s3034_s30 }
   0xb   : > { %p31_p1 = scmp.eq.s32.totalorder %s30_s14, 0  ;;  %p41_p2 = scmp.eq.s32.totalorder %s3042_s10, 0 }
   0xc   : > { %p46_p3 = scmp.ne.s32.totalorder %s3034_s30, %s3030_s29  ;;  %p47_p4 = scmp.eq.s32.totalorder %s3119_s7, 0 }
   0xd   : > { %s3135_s15 = scalar_select %p31_p1, %s3038_s9, %s33_s13  }
   0xe   : > { %p42_p5 = por %p41_p2, %p40_p0  ;;  %p3137_p6 = por %p47_p4, %p46_p3 }
   0xf   : > { %p217_p7 = scmp.eq.s32.totalorder %s3119_s7, 1  ;;  %p223_p8 = scmp.eq.s32.totalorder %s2382_s11, 1 }
  0x10   : > { %p2847_p10 = scmp.lt.s32.totalorder %s3042_s10, 2  ;;  %s264_s19 = sand.u32 1, %s3038_s9  }
  0x11   : > { %p3144_p11 = por %p217_p7, %p40_p0  ;;  %p3148_p12 = por %p223_p8, %p46_p3 }
  0x12   : > { %s2833_s20 = smul.u32 3072, %s3042_s10  ;;  %p3159_p13 = pnand %p2847_p10, %p42_p5 }
  0x13   : > { %s4137_s17 = scalar_select %p3144_p11, 1, 0 }
  0x14   : > { %s4138_s18 = scalar_select %p3148_p12, 1, 0 }
  0x15   : > { %s2832_s21 = smul.u32 192, %s264_s19  ;;  %s3157_s24 = scalar_lea.hbm %s4126_s0, %s2833_s20 }
  0x16   : > { %s3165_s28 = scalar_lea.sflag [#allocation8], %s264_s19  ;;  %s2946_s11 = scalar_lea.hbm %s3157_s24, 3072 }
  0x17   : > { %s268_s26 = scalar_lea.vmem [#allocation7], %s2832_s21  ;;  %p2947_p0 = scmp.ne.s32.totalorder %s3157_s24, %s2946_s11 }
  0x18   : > { %s275_s27 = sshll.u32 %s268_s26, 4  ;;  %p2948_p1 = pneg %p3159_p13  ;;  %s3163_s27 = int_to_ptr.vmem [resolvable:$true] %s275_s27 }
  0x19   : > { %s2951_s20 = scalar_lea.hbm %s4126_s0, 6144  ;;  %p2952_p4 = scmp.lt.u32.totalorder %s3157_s24, %s4126_s0 }
  0x1a   : > { %p2949_p2 = pnand %p2948_p1, %p2947_p0  ;;  %p2953_p5 = scmp.lt.u32.totalorder %s2951_s20, %s2946_s11 }
  0x1b   : > { %p2955_p8 = scmp.lt.u32.totalorder %s2946_s11, %s3157_s24 }
  0x1c   : > { %p2950_p3 = pneg %p2949_p2  ;;  %p2954_p7 = por %p2953_p5, %p2952_p4 }
  0x1e   : > { %p2956_p10 = por %p2955_p8, %p2954_p7 }
  0x20   : > { %p2957_p9 = pnand %p2956_p10, %p2950_p3 }
  0x22   : > { %2960 = shalt.err (!%p2957_p9)
}
  0x23   : > { %s2961_s19 = scalar_lea.vmem %s3163_s27, 3072  ;;  %s3044_s21 = smov [#allocation7]  }
  0x24   : > { %p2962_p0 = scmp.ne.s32.totalorder %s3163_s27, %s2961_s19  ;;  %s2966_s26 = sshll.u32 %s3044_s21, 4  ;;  %s2967_s26 = int_to_ptr.vmem [resolvable:$false] %s2966_s26 }
  0x25   : > { %s2968_s13 = scalar_lea.vmem %s2967_s26, 6144  ;;  %p2969_p11 = scmp.lt.s32.totalorder %s3163_s27, %s2967_s26 }
  0x26   : > { %p2964_p2 = pnand %p2962_p0, %p2948_p1  ;;  %p2970_p4 = scmp.lt.s32.totalorder %s2968_s13, %s2961_s19 }
  0x28   : > { %p2965_p12 = pneg %p2964_p2  ;;  %p2971_p5 = por %p2970_p4, %p2969_p11 }
  0x2a   : > { %p2972_p7 = pnand %p2971_p5, %p2965_p12 }
  0x2c   : > { %2975 = shalt.err (!%p2972_p7)
}
  0x2d   : > { %s3045_s11 = smov 128   ;;  %s3046_s14 = smov 8  }
  0x2e   : > { %2842 = dma.hbm_to_vmem [thread:$0]  (!%p3159_p13), %s3157_s24, 3072, %s3163_s27, %s3165_s28, %s3045_s11, %s3045_s11, %s3046_s14  }
  0x2f   : > { %p2386_p9 = scmp.ge.s32.totalorder %s3042_s10, 1  ;;  %p283_p1 = scmp.lt.s32.totalorder %s3042_s10, 3 }
  0x31   : > { %p284_p3 = pnand %p2386_p9, %p283_p1 }
  0x32   : > { %s3196_s20 = sand.u32 (!%p284_p3), 1, %s3034_s30  }
  0x33   : > { %287 = sbr.rel (%p284_p3) target bundleno = 1749 (0x6d5), region = 52  ;;  %s290_s23 = scalar_lea.sflag (!%p284_p3), [#allocation8], %s3196_s20 }
  0x34   : > { %s2834_s22 = smul.u32 (!%p284_p3), 192, %s3196_s20 }
  0x36   : > { %s3200_s19 = scalar_lea.vmem (!%p284_p3), [#allocation7], %s2834_s22 }
  0x3a   : > { %3021 = dma.done.wait (%p3137_p6), %s290_s23, 3072  }
  0x3b   : > { %3023 = vsyncadd (%p3137_p6), %s290_s23, 4294964224  ;;  %v3047_v1 = vmov 0.0|0.0   ;;  %v3048_v2 = vmov 0   ;;  %v325_v3 = vld [vmem:[%s3200_s19] sm:$0xff]  ;;  %v326_v4 = vld [vmem:[%s3200_s19 + $0x8] sm:$0xff]  ;;  %vm637_vm0 = vcmask 523264  }
  0x3c   : > { %2716 = vmatprep.subr.bf16.mxu0 %v3047_v1  ;;  %2887 = vset.pattern.permute.xlu1 %v3048_v2  ;;  %v327_v5 = vld [vmem:[%s3200_s19 + $0x10] sm:$0xff]  ;;  %v2717_v6 = vpack.c.bf16 %v326_v4, %v325_v3  ;;  %v328_v7 = vld [vmem:[%s3200_s19 + $0x18] sm:$0xff]  ;;  %v329_v9 = vld [vmem:[%s3200_s19 + $0x20] sm:$0xff]  ;;  %vm1095_vm1 = vcmask 785408   ;;  %vm2241_vm2 = vcmask 7168   ;;  %s324_s28 = scalar_lea.vmem [#allocation10], %s3196_s20 }
  0x3d   : > { %2886 = vset.pattern.permute.xlu0 %v3048_v2  ;;  %v2720_v8 = vpack.c.bf16 %v328_v7, %v327_v5  ;;  %v330_v10 = vld [vmem:[%s3200_s19 + $0x28] sm:$0xff]  ;;  %v331_v12 = vld [vmem:[%s3200_s19 + $0x30] sm:$0xff]  ;;  %v332_v13 = vld [vmem:[%s3200_s19 + $0x38] sm:$0xff]  ;;  %s2316_s21 = sshll.u32 %s324_s28, 4  ;;  %s2463_s26 = sshll.u32 %s3119_s7, 4  ;;  %s4079_s21 = int_to_ptr.vmem [resolvable:$true] %s2316_s21 }
  0x3e   : > { %2718 = vmatpush1.bf16.msra.mxu0 %v2717_v6  ;;  %v2723_v11 = vpack.c.bf16 %v330_v10, %v329_v9  ;;  %v350_v14 = vld [vmem:[%s4127_s1 + $0x8] sm:$0xff]  ;;  %v447_v15 = vld [vmem:[%s4128_s2 + $0xd0] sm:$0xff]  ;;  %v2726_v16 = vpack.c.bf16 %v332_v13, %v331_v12  ;;  %v448_v17 = vld [vmem:[%s4128_s2 + $0xd8] sm:$0xff]  ;;  %s4084_s14 = scalar_lea.hbm %s4134_s8, %s2463_s26  ;;  %s2304_s22 = scalar_lea.sflag [#allocation9], %s3196_s20 }
  0x3f   : > { %2719 = vmatprep.subr.bf16.mxu0 %v3047_v1  ;;  %2387 = vmatprep.mubr.msk.f32.mxu0 %vm637_vm0, %v350_v14  ;;  %v333_v18 = vld [vmem:[%s3200_s19 + $0x40] sm:$0xff]  ;;  %v334_v19 = vld [vmem:[%s3200_s19 + $0x48] sm:$0xff]  ;;  %v335_v22 = vld [vmem:[%s3200_s19 + $0x50] sm:$0xff]  ;;  %s2976_s23 = scalar_lea.vmem %s4079_s21, 16  ;;  %p4140_p11 = scmp.ne.s32.totalorder %s4137_s17, 0 }
  0x40   : > { %589 = vperm.xlu1 %2887, %v447_v15   ;;  %v2729_v20 = vpack.c.bf16 %v334_v19, %v333_v18  ;;  %v450_v21 = vld [vmem:[%s4128_s2 + $0xe8] sm:$0xff]  ;;  %v336_v23 = vld [vmem:[%s3200_s19 + $0x58] sm:$0xff]  ;;  %v339_v30 = vld [vmem:[%s3200_s19 + $0x70] sm:$0xff]  ;;  %p2977_p6 = scmp.ne.s32.totalorder %s4079_s21, %s2976_s23 }
  0x41   : > { %v2732_v24 = vpack.c.bf16 %v336_v23, %v335_v22  ;;  %v452_v25 = vld [vmem:[%s4128_s2 + $0xf8] sm:$0xff]  ;;  %v337_v26 = vld [vmem:[%s3200_s19 + $0x60] sm:$0xff]  ;;  %v338_v27 = vld [vmem:[%s3200_s19 + $0x68] sm:$0xff] }
  0x42   : > { %2721 = vmatpush1.bf16.msra.mxu0 %v2720_v8  ;;  %v2735_v28 = vpack.c.bf16 %v338_v27, %v337_v26  ;;  %v454_v29 = vld [vmem:[%s4128_s2 + $0x108] sm:$0xff]  ;;  %v340_v31 = vld [vmem:[%s3200_s19 + $0x78] sm:$0xff]  ;;  %v343_v38 = vld [vmem:[%s3200_s19 + $0x90] sm:$0xff]  ;;  %p2978_p12 = pnand %p2977_p6, %p4140_p11 }
  0x43   : > { %2722 = vmatprep.subr.bf16.mxu0 %v3047_v1  ;;  %v2738_v32 = vpack.c.bf16 %v340_v31, %v339_v30  ;;  %v456_v33 = vld [vmem:[%s4128_s2 + $0x118] sm:$0xff]  ;;  %v341_v34 = vld [vmem:[%s3200_s19 + $0x80] sm:$0xff]  ;;  %v342_v35 = vld [vmem:[%s3200_s19 + $0x88] sm:$0xff] }
  0x44   : > { %594 = vperm.xlu1 %2887, %v448_v17   ;;  %v2741_v36 = vpack.c.bf16 %v342_v35, %v341_v34  ;;  %v434_v37 = vld [vmem:[%s4128_s2 + $0x68] sm:$0xff]  ;;  %v344_v39 = vld [vmem:[%s3200_s19 + $0x98] sm:$0xff]  ;;  %v347_v48 = vld [vmem:[%s3200_s19 + $0xb0] sm:$0xff]  ;;  %p2979_p13 = pneg %p2978_p12 }
  0x45   : > { %v445_v40 = vld [vmem:[%s4128_s2 + $0xc0] sm:$0xff]  ;;  %v2744_v41 = vpack.c.bf16 %v344_v39, %v343_v38  ;;  %v436_v42 = vld [vmem:[%s4128_s2 + $0x78] sm:$0xff]  ;;  %v346_v44 = vld [vmem:[%s3200_s19 + $0xa8] sm:$0xff] }
  0x46   : > { %2724 = vmatpush1.bf16.msra.mxu0 %v2723_v11  ;;  %579 = vperm.xlu0 %2886, %v445_v40   ;;  %v345_v43 = vld [vmem:[%s3200_s19 + $0xa0] sm:$0xff]  ;;  %v348_v49 = vld [vmem:[%s3200_s19 + $0xb8] sm:$0xff]  ;;  %v451_v53 = vld [vmem:[%s4128_s2 + $0xf0] sm:$0xff] }
  0x47   : > { %2725 = vmatprep.subr.bf16.mxu0 %v3047_v1  ;;  %v446_v45 = vld [vmem:[%s4128_s2 + $0xc8] sm:$0xff]  ;;  %v2747_v46 = vpack.c.bf16 %v346_v44, %v345_v43  ;;  %v449_v50 = vld [vmem:[%s4128_s2 + $0xe0] sm:$0xff]  ;;  %v2750_v51 = vpack.c.bf16 %v348_v49, %v347_v48  ;;  %v440_v52 = vld [vmem:[%s4128_s2 + $0x98] sm:$0xff] }
  0x48   : > { %604 = vperm.xlu1 %2887, %v450_v21   ;;  %v438_v47 = vld [vmem:[%s4128_s2 + $0x88] sm:$0xff]  ;;  %v349_v54 = vld [vmem:[%s4127_s1] sm:$0xff]  ;;  %v352_v56 = vld [vmem:[%s4127_s1 + $0x18] sm:$0xff] }
  0x49   : > { %v442_v55 = vld [vmem:[%s4128_s2 + $0xa8] sm:$0xff]  ;;  %v453_v57 = vld [vmem:[%s4128_s2 + $0x100] sm:$0xff]  ;;  %v351_v58 = vld [vmem:[%s4127_s1 + $0x10] sm:$0xff] }
  0x4a   : > { %2727 = vmatpush1.bf16.msra.mxu0 %v2726_v16  ;;  %584 = vperm.xlu0 %2886, %v446_v45   ;;  %v444_v59 = vld [vmem:[%s4128_s2 + $0xb8] sm:$0xff]  ;;  %v354_v60 = vld [vmem:[%s4127_s1 + $0x28] sm:$0xff]  ;;  %v455_v61 = vld [vmem:[%s4128_s2 + $0x110] sm:$0xff] }
  0x4b   : > { %2728 = vmatprep.subr.bf16.mxu0 %v3047_v1  ;;  %v353_v62 = vld [vmem:[%s4127_s1 + $0x20] sm:$0xff]  ;;  %v356_v0 = vld [vmem:[%s4127_s1 + $0x38] sm:$0xff]  ;;  %v355_v2 = vld [vmem:[%s4127_s1 + $0x30] sm:$0xff] }
  0x4c   : > { %614 = vperm.xlu1 %2887, %v452_v25   ;;  %v421_v63 = vld [vmem:[%s4128_s2] sm:$0xff]  ;;  %v422_v3 = vld [vmem:[%s4128_s2 + $0x8] sm:$0xff]  ;;  %v435_v5 = vld [vmem:[%s4128_s2 + $0x70] sm:$0xff] }
  0x4d   : > { %v358_v4 = vld [vmem:[%s4127_s1 + $0x48] sm:$0xff]  ;;  %v357_v6 = vld [vmem:[%s4127_s1 + $0x40] sm:$0xff]  ;;  %v423_v7 = vld [vmem:[%s4128_s2 + $0x10] sm:$0xff] }
  0x4e   : > { %2730 = vmatpush1.bf16.msra.mxu0 %v2729_v20  ;;  %599 = vperm.xlu0 %2886, %v449_v50   ;;  %v360_v8 = vld [vmem:[%s4127_s1 + $0x58] sm:$0xff]  ;;  %v437_v9 = vld [vmem:[%s4128_s2 + $0x80] sm:$0xff]  ;;  %v359_v10 = vld [vmem:[%s4127_s1 + $0x50] sm:$0xff] }
  0x4f   : > { %2731 = vmatprep.subr.bf16.mxu0 %v3047_v1  ;;  %v424_v11 = vld [vmem:[%s4128_s2 + $0x18] sm:$0xff]  ;;  %v362_v12 = vld [vmem:[%s4127_s1 + $0x68] sm:$0xff]  ;;  %v439_v13 = vld [vmem:[%s4128_s2 + $0x90] sm:$0xff] }
  0x50   : > { %624 = vperm.xlu1 %2887, %v454_v29   ;;  %v361_v14 = vld [vmem:[%s4127_s1 + $0x60] sm:$0xff]  ;;  %v364_v16 = vld [vmem:[%s4127_s1 + $0x78] sm:$0xff]  ;;  %v363_v18 = vld [vmem:[%s4127_s1 + $0x70] sm:$0xff] }
  0x51   : > { %v425_v15 = vld [vmem:[%s4128_s2 + $0x20] sm:$0xff]  ;;  %v426_v19 = vld [vmem:[%s4128_s2 + $0x28] sm:$0xff]  ;;  %v443_v21 = vld [vmem:[%s4128_s2 + $0xb0] sm:$0xff] }
  0x52   : > { %2733 = vmatpush1.bf16.msra.mxu0 %v2732_v24  ;;  %609 = vperm.xlu0 %2886, %v451_v53   ;;  %v441_v17 = vld [vmem:[%s4128_s2 + $0xa0] sm:$0xff]  ;;  %v366_v20 = vld [vmem:[%s4127_s1 + $0x88] sm:$0xff]  ;;  %v427_v23 = vld [vmem:[%s4128_s2 + $0x30] sm:$0xff] }
  0x53   : > { %2734 = vmatprep.subr.bf16.mxu0 %v3047_v1  ;;  %v365_v22 = vld [vmem:[%s4127_s1 + $0x80] sm:$0xff]  ;;  %v368_v24 = vld [vmem:[%s4127_s1 + $0x98] sm:$0xff]  ;;  %v367_v25 = vld [vmem:[%s4127_s1 + $0x90] sm:$0xff] }
  0x54   : > { %634 = vperm.xlu1 %2887, %v456_v33   ;;  %v428_v26 = vld [vmem:[%s4128_s2 + $0x38] sm:$0xff]  ;;  %v370_v27 = vld [vmem:[%s4127_s1 + $0xa8] sm:$0xff]  ;;  %v429_v29 = vld [vmem:[%s4128_s2 + $0x40] sm:$0xff] }
  0x55   : > { %v372_v30 = vld [vmem:[%s4127_s1 + $0xb8] sm:$0xff]  ;;  %v371_v31 = vld [vmem:[%s4127_s1 + $0xb0] sm:$0xff]  ;;  %v374_v33 = vld [vmem:[%s4127_s1 + $0xc8] sm:$0xff] }
  0x56   : > { %2736 = vmatpush1.bf16.msra.mxu0 %v2735_v28  ;;  %619 = vperm.xlu0 %2886, %v453_v57   ;;  %v369_v28 = vld [vmem:[%s4127_s1 + $0xa0] sm:$0xff]  ;;  %v431_v35 = vld [vmem:[%s4128_s2 + $0x50] sm:$0xff]  ;;  %v432_v38 = vld [vmem:[%s4128_s2 + $0x58] sm:$0xff] }
  0x57   : > { %2737 = vmatprep.subr.bf16.mxu0 %v3047_v1  ;;  %v373_v34 = vld [vmem:[%s4127_s1 + $0xc0] sm:$0xff]  ;;  %v378_v39 = vld [vmem:[%s4127_s1 + $0xe8] sm:$0xff]  ;;  %v379_v43 = vld [vmem:[%s4127_s1 + $0xf0] sm:$0xff] }
  0x58   : > { %524 = vperm.xlu1 %2887, %v434_v37   ;;  %v375_v37 = vld [vmem:[%s4127_s1 + $0xd0] sm:$0xff]  ;;  %v377_v40 = vld [vmem:[%s4127_s1 + $0xe0] sm:$0xff]  ;;  %v1576_v44 = vld [vmem:[%s4130_s4 + $0x8] sm:$0xff] }
  0x59   : > { %v382_v45 = vld [vmem:[%s4127_s1 + $0x108] sm:$0xff]  ;;  %v384_v48 = vld [vmem:[%s4127_s1 + $0x118] sm:$0xff]  ;;  %v383_v49 = vld [vmem:[%s4127_s1 + $0x110] sm:$0xff] }
  0x5a   : > { %2739 = vmatpush1.bf16.msra.mxu0 %v2738_v32  ;;  %629 = vperm.xlu0 %2886, %v455_v61   ;;  %v430_v32 = vld [vmem:[%s4128_s2 + $0x48] sm:$0xff]  ;;  %v1578_v50 = vld [vmem:[%s4130_s4 + $0x18] sm:$0xff]  ;;  %v1579_v53 = vld [vmem:[%s4130_s4 + $0x20] sm:$0xff] }
  0x5b   : > { %2740 = vmatprep.subr.bf16.mxu0 %v3047_v1  ;;  %v390_v57 = vld [vmem:[%s4127_s1 + $0x148] sm:$0xff]  ;;  %v391_v61 = vld [vmem:[%s4127_s1 + $0x150] sm:$0xff] }
  0x5c   : > { %534 = vperm.xlu1 %2887, %v436_v42   ;;  %v380_v42 = vld [vmem:[%s4127_s1 + $0xf8] sm:$0xff] }
  0x5e   : > { %2742 = vmatpush1.bf16.msra.mxu0 %v2741_v36  ;;  %v376_v36 = vld [vmem:[%s4127_s1 + $0xd8] sm:$0xff] }
  0x5f   : > { %2743 = vmatprep.subr.bf16.mxu0 %v3047_v1 }
  0x60   : > { %544 = vperm.xlu1 %2887, %v438_v47   ;;  %v1577_v47 = vld [vmem:[%s4130_s4 + $0x10] sm:$0xff] }
  0x62   : > { %2745 = vmatpush1.bf16.msra.mxu0 %v2744_v41  ;;  %v1575_v41 = vld [vmem:[%s4130_s4] sm:$0xff] }
  0x63   : > { %2746 = vmatprep.subr.bf16.mxu0 %v3047_v1 }
  0x64   : > { %554 = vperm.xlu1 %2887, %v440_v52   ;;  %v385_v52 = vld [vmem:[%s4127_s1 + $0x120] sm:$0xff] }
  0x66   : > { %2748 = vmatpush1.bf16.msra.mxu0 %v2747_v46  ;;  %v381_v46 = vld [vmem:[%s4127_s1 + $0x100] sm:$0xff] }
  0x67   : > { %2749 = vmatprep.subr.bf16.mxu0 %v3047_v1  ;;  %v433_v1 = vld [vmem:[%s4128_s2 + $0x60] sm:$0xff] }
  0x68   : > { %564 = vperm.xlu1 %2887, %v442_v55   ;;  %519 = vperm.xlu0 %2886, %v433_v1   ;;  %v387_v55 = vld [vmem:[%s4127_s1 + $0x130] sm:$0xff]  ;;  %v1584_v1 = vld [vmem:[%s4130_s4 + $0x48] sm:$0xff] }
  0x6a   : > { %2751 = vmatpush1.bf16.msra.mxu0 %v2750_v51  ;;  %v386_v51 = vld [vmem:[%s4127_s1 + $0x128] sm:$0xff] }
  0x6c   : > { %574 = vperm.xlu1 %2887, %v444_v59   ;;  %529 = vperm.xlu0 %2886, %v435_v5   ;;  %v1581_v59 = vld [vmem:[%s4130_s4 + $0x30] sm:$0xff]  ;;  %v398_v5 = vld [vmem:[%s4127_s1 + $0x188] sm:$0xff] }
  0x6d   : > { %811 = vmatmul.mubr.f32.vlgmr.msra.gmra.mrb[0].mxu0 %v349_v54  ;;  %v388_v54 = vld [vmem:[%s4127_s1 + $0x138] sm:$0xff] }
  0x6e   : > { %2388 = vmatprep.mubr.msk.f32.mxu0 %vm637_vm0, %v352_v56  ;;  %v1580_v56 = vld [vmem:[%s4130_s4 + $0x28] sm:$0xff] }
  0x70   : > { %459 = vperm.xlu1 %2887, %v421_v63   ;;  %539 = vperm.xlu0 %2886, %v437_v9   ;;  %v394_v63 = vld [vmem:[%s4127_s1 + $0x168] sm:$0xff]  ;;  %v399_v9 = vld [vmem:[%s4127_s1 + $0x190] sm:$0xff] }
  0x71   : > { %816 = vmatmul.mubr.f32.gmra.mrb[2].mxu0 %v351_v58  ;;  %v389_v58 = vld [vmem:[%s4127_s1 + $0x140] sm:$0xff] }
  0x72   : > { %2389 = vmatprep.mubr.msk.f32.mxu0 %vm637_vm0, %v354_v60  ;;  %v392_v60 = vld [vmem:[%s4127_s1 + $0x158] sm:$0xff] }
  0x74   : > { %464 = vperm.xlu1 %2887, %v422_v3   ;;  %549 = vperm.xlu0 %2886, %v439_v13   ;;  %v395_v3 = vld [vmem:[%s4127_s1 + $0x170] sm:$0xff]  ;;  %v1588_v13 = vld [vmem:[%s4130_s4 + $0x68] sm:$0xff] }
  0x75   : > { %821 = vmatmul.mubr.f32.gmra.mrb[4].mxu0 %v353_v62  ;;  %v1583_v62 = vld [vmem:[%s4130_s4 + $0x40] sm:$0xff] }
  0x76   : > { %2390 = vmatprep.mubr.msk.f32.mxu0 %vm637_vm0, %v356_v0  ;;  %v393_v0 = vld [vmem:[%s4127_s1 + $0x160] sm:$0xff] }
  0x78   : > { %469 = vperm.xlu1 %2887, %v423_v7   ;;  %559 = vperm.xlu0 %2886, %v441_v17   ;;  %v1586_v7 = vld [vmem:[%s4130_s4 + $0x58] sm:$0xff]  ;;  %v406_v17 = vld [vmem:[%s4127_s1 + $0x1c8] sm:$0xff] }
  0x79   : > { %826 = vmatmul.mubr.f32.gmra.mrb[6].mxu0 %v355_v2  ;;  %v396_v2 = vld [vmem:[%s4127_s1 + $0x178] sm:$0xff] }
  0x7a   : > { %2391 = vmatprep.mubr.msk.f32.mxu0 %vm637_vm0, %v358_v4  ;;  %v1585_v4 = vld [vmem:[%s4130_s4 + $0x50] sm:$0xff] }
  0x7c   : > { %474 = vperm.xlu1 %2887, %v424_v11   ;;  %569 = vperm.xlu0 %2886, %v443_v21   ;;  %v402_v11 = vld [vmem:[%s4127_s1 + $0x1a8] sm:$0xff]  ;;  %v407_v21 = vld [vmem:[%s4127_s1 + $0x1d0] sm:$0xff] }
  0x7d   : > { %831 = vmatmul.mubr.f32.gmra.mrb[8].mxu0 %v357_v6  ;;  %v397_v6 = vld [vmem:[%s4127_s1 + $0x180] sm:$0xff] }
  0x7e   : > { %2392 = vmatprep.mubr.msk.f32.mxu0 %vm637_vm0, %v360_v8  ;;  %v400_v8 = vld [vmem:[%s4127_s1 + $0x198] sm:$0xff] }
  0x80   : > { %479 = vperm.xlu1 %2887, %v425_v15   ;;  %v403_v15 = vld [vmem:[%s4127_s1 + $0x1b0] sm:$0xff] }
  0x81   : > { %836 = vmatmul.mubr.f32.gmra.mrb[10].mxu0 %v359_v10  ;;  %v1587_v10 = vld [vmem:[%s4130_s4 + $0x60] sm:$0xff] }
  0x82   : > { %2393 = vmatprep.mubr.msk.f32.mxu0 %vm637_vm0, %v362_v12  ;;  %v401_v12 = vld [vmem:[%s4127_s1 + $0x1a0] sm:$0xff] }
  0x84   : > { %484 = vperm.xlu1 %2887, %v426_v19   ;;  %v1590_v19 = vld [vmem:[%s4130_s4 + $0x78] sm:$0xff] }
  0x85   : > { %841 = vmatmul.mubr.f32.gmra.mrb[12].mxu0 %v361_v14  ;;  %v404_v14 = vld [vmem:[%s4127_s1 + $0x1b8] sm:$0xff] }
  0x86   : > { %2394 = vmatprep.mubr.msk.f32.mxu0 %vm637_vm0, %v364_v16  ;;  %v1589_v16 = vld [vmem:[%s4130_s4 + $0x70] sm:$0xff] }
  0x88   : > { %489 = vperm.xlu1 %2887, %v427_v23   ;;  %v410_v23 = vld [vmem:[%s4127_s1 + $0x1e8] sm:$0xff] }
  0x89   : > { %846 = vmatmul.mubr.f32.gmra.mrb[14].mxu0 %v363_v18  ;;  %v405_v18 = vld [vmem:[%s4127_s1 + $0x1c0] sm:$0xff] }
  0x8a   : > { %2395 = vmatprep.mubr.msk.f32.mxu0 %vm637_vm0, %v366_v20  ;;  %v408_v20 = vld [vmem:[%s4127_s1 + $0x1d8] sm:$0xff] }
  0x8c   : > { %494 = vperm.xlu1 %2887, %v428_v26   ;;  %v412_v26 = vld [vmem:[%s4127_s1 + $0x1f8] sm:$0xff] }
  0x8d   : > { %851 = vmatmul.mubr.f32.gmra.mrb[16].mxu0 %v365_v22  ;;  %v1591_v22 = vld [vmem:[%s4130_s4 + $0x80] sm:$0xff] }
  0x8e   : > { %2396 = vmatprep.mubr.msk.f32.mxu0 %vm637_vm0, %v368_v24  ;;  %v409_v24 = vld [vmem:[%s4127_s1 + $0x1e0] sm:$0xff] }
  0x90   : > { %499 = vperm.xlu1 %2887, %v429_v29   ;;  %v414_v29 = vld [vmem:[%s4127_s1 + $0x208] sm:$0xff] }
  0x91   : > { %856 = vmatmul.mubr.f32.gmra.mrb[18].mxu0 %v367_v25  ;;  %v1592_v25 = vld [vmem:[%s4130_s4 + $0x88] sm:$0xff] }
  0x92   : > { %2397 = vmatprep.mubr.msk.f32.mxu0 %vm637_vm0, %v370_v27  ;;  %v411_v27 = vld [vmem:[%s4127_s1 + $0x1f0] sm:$0xff] }
  0x94   : > { %504 = vperm.xlu1 %2887, %v430_v32   ;;  %v416_v32 = vld [vmem:[%s4127_s1 + $0x218] sm:$0xff] }
  0x95   : > { %861 = vmatmul.mubr.f32.gmra.mrb[20].mxu0 %v369_v28  ;;  %v1593_v28 = vld [vmem:[%s4130_s4 + $0x90] sm:$0xff] }
  0x96   : > { %2398 = vmatprep.mubr.msk.f32.mxu0 %vm637_vm0, %v372_v30  ;;  %v413_v30 = vld [vmem:[%s4127_s1 + $0x200] sm:$0xff] }
  0x98   : > { %509 = vperm.xlu1 %2887, %v431_v35   ;;  %v418_v35 = vld [vmem:[%s4127_s1 + $0x228] sm:$0xff] }
  0x99   : > { %866 = vmatmul.mubr.f32.gmra.mrb[22].mxu0 %v371_v31  ;;  %v1594_v31 = vld [vmem:[%s4130_s4 + $0x98] sm:$0xff] }
  0x9a   : > { %2399 = vmatprep.mubr.msk.f32.mxu0 %vm637_vm0, %v374_v33  ;;  %v415_v33 = vld [vmem:[%s4127_s1 + $0x210] sm:$0xff] }
  0x9c   : > { %514 = vperm.xlu1 %2887, %v432_v38   ;;  %v420_v38 = vld [vmem:[%s4127_s1 + $0x238] sm:$0xff] }
  0x9d   : > { %871 = vmatmul.mubr.f32.gmra.mrb[24].mxu0 %v373_v34  ;;  %v1595_v34 = vld [vmem:[%s4130_s4 + $0xa0] sm:$0xff] }
  0x9e   : > { %2400 = vmatprep.mubr.msk.f32.mxu0 %vm637_vm0, %v376_v36  ;;  %v417_v36 = vld [vmem:[%s4127_s1 + $0x220] sm:$0xff] }
  0xa0   : > { %1601 = vperm.xlu1 %2887, %v1575_v41  }
  0xa1   : > { %876 = vmatmul.mubr.f32.gmra.mrb[26].mxu0 %v375_v37  ;;  %v1596_v37 = vld [vmem:[%s4130_s4 + $0xa8] sm:$0xff] }
  0xa2   : > { %2401 = vmatprep.mubr.msk.f32.mxu0 %vm637_vm0, %v378_v39  ;;  %v419_v39 = vld [vmem:[%s4127_s1 + $0x230] sm:$0xff] }
  0xa4   : > { %1606 = vperm.xlu1 %2887, %v1576_v44  }
  0xa5   : > { %881 = vmatmul.mubr.f32.gmra.mrb[28].mxu0 %v377_v40  ;;  %v1598_v40 = vld [vmem:[%s4130_s4 + $0xb8] sm:$0xff] }
  0xa6   : > { %2402 = vmatprep.mubr.msk.f32.mxu0 %vm637_vm0, %v380_v42 }
  0xa8   : > { %1611 = vperm.xlu1 %2887, %v1577_v47  }
  0xa9   : > { %886 = vmatmul.mubr.f32.gmra.mrb[30].mxu0 %v379_v43 }
  0xaa   : > { %2403 = vmatprep.mubr.msk.f32.mxu0 %vm637_vm0, %v382_v45 }
  0xac   : > { %1616 = vperm.xlu1 %2887, %v1578_v50  }
  0xad   : > { %891 = vmatmul.mubr.f32.gmra.mrb[32].mxu0 %v381_v46 }
  0xae   : > { %2404 = vmatprep.mubr.msk.f32.mxu0 %vm637_vm0, %v384_v48 }
  0xb0   : > { %1621 = vperm.xlu1 %2887, %v1579_v53  }
  0xb1   : > { %896 = vmatmul.mubr.f32.gmra.mrb[34].mxu0 %v383_v49 }
  0xb2   : > { %2405 = vmatprep.mubr.msk.f32.mxu0 %vm637_vm0, %v386_v51 }
  0xb4   : > { %1626 = vperm.xlu1 %2887, %v1580_v56  }
  0xb5   : > { %901 = vmatmul.mubr.f32.gmra.mrb[36].mxu0 %v385_v52 }
  0xb6   : > { %2406 = vmatprep.mubr.msk.f32.mxu0 %vm637_vm0, %v388_v54 }
  0xb8   : > { %1631 = vperm.xlu1 %2887, %v1581_v59  }
  0xb9   : > { %906 = vmatmul.mubr.f32.gmra.mrb[38].mxu0 %v387_v55 }
  0xba   : > { %2407 = vmatprep.mubr.msk.f32.mxu0 %vm637_vm0, %v390_v57 }
  0xbc   : > { %1641 = vperm.xlu1 %2887, %v1583_v62  }
  0xbd   : > { %911 = vmatmul.mubr.f32.gmra.mrb[40].mxu0 %v389_v58 }
  0xbe   : > { %2408 = vmatprep.mubr.msk.f32.mxu0 %vm637_vm0, %v392_v60 }
  0xbf   : > { %v3678_v50 = vpop.permute.xlu1 %589 }
  0xc0   : > { %1646 = vperm.xlu1 %2887, %v1584_v1  }
  0xc1   : > { %916 = vmatmul.mubr.f32.gmra.mrb[42].mxu0 %v391_v61 }
  0xc2   : > { %2409 = vmatprep.mubr.msk.f32.mxu0 %vm637_vm0, %v394_v63 }
  0xc3   : > { %v3686_v56 = vpop.permute.xlu1 %594 }
  0xc4   : > { %1651 = vperm.xlu1 %2887, %v1585_v4  }
  0xc5   : > { %921 = vmatmul.mubr.f32.gmra.mrb[44].mxu0 %v393_v0  ;;  %v3676_v49 = vpop.permute.xlu0 %579 }
  0xc6   : > { %2410 = vmatprep.mubr.msk.f32.mxu0 %vm637_vm0, %v396_v2 }
  0xc7   : > { %v3692_v60 = vpop.permute.xlu1 %604 }
  0xc8   : > { %1656 = vperm.xlu1 %2887, %v1586_v7  }
  0xc9   : > { %926 = vmatmul.mubr.f32.gmra.mrb[46].mxu0 %v395_v3  ;;  %v3684_v54 = vpop.permute.xlu0 %584 }
  0xca   : > { %2411 = vmatprep.mubr.msk.f32.mxu0 %vm637_vm0, %v398_v5 }
  0xcb   : > { %v3700_v2 = vpop.permute.xlu1 %614 }
  0xcc   : > { %1661 = vperm.xlu1 %2887, %v1587_v10  }
  0xcd   : > { %931 = vmatmul.mubr.f32.gmra.mrb[48].mxu0 %v397_v6  ;;  %v3690_v59 = vpop.permute.xlu0 %599 }
  0xce   : > { %2412 = vmatprep.mubr.msk.f32.mxu0 %vm637_vm0, %v400_v8 }
  0xcf   : > { %v3706_v6 = vpop.permute.xlu1 %624 }
  0xd0   : > { %1666 = vperm.xlu1 %2887, %v1588_v13  }
  0xd1   : > { %936 = vmatmul.mubr.f32.gmra.mrb[50].mxu0 %v399_v9  ;;  %v3698_v0 = vpop.permute.xlu0 %609 }
  0xd2   : > { %2413 = vmatprep.mubr.msk.f32.mxu0 %vm637_vm0, %v402_v11 }
  0xd4   : > { %1671 = vperm.xlu1 %2887, %v1589_v16  }
  0xd5   : > { %941 = vmatmul.mubr.f32.gmra.mrb[52].mxu0 %v401_v12  ;;  %v3704_v5 = vpop.permute.xlu0 %619  ;;  %v3714_v12 = vpop.permute.xlu1 %634 }
  0xd6   : > { %2414 = vmatprep.mubr.msk.f32.mxu0 %vm637_vm0, %v404_v14 }
  0xd8   : > { %1676 = vperm.xlu1 %2887, %v1590_v19  }
  0xd9   : > { %946 = vmatmul.mubr.f32.gmra.mrb[54].mxu0 %v403_v15  ;;  %v3710_v9 = vpop.permute.xlu0 %629  ;;  %v525_v16 = vpop.permute.xlu1 %524 }
  0xda   : > { %2415 = vmatprep.mubr.msk.f32.mxu0 %vm637_vm0, %v406_v17 }
  0xdc   : > { %1681 = vperm.xlu1 %2887, %v1591_v22  }
  0xdd   : > { %951 = vmatmul.mubr.f32.gmra.mrb[56].mxu0 %v405_v18 }
  0xde   : > { %2416 = vmatprep.mubr.msk.f32.mxu0 %vm637_vm0, %v408_v20 }
  0xe0   : > { %1686 = vperm.xlu1 %2887, %v1592_v25   ;;  %v535_v25 = vpop.permute.xlu1 %534 }
  0xe1   : > { %956 = vmatmul.mubr.f32.gmra.mrb[58].mxu0 %v407_v21 }
  0xe2   : > { %2417 = vmatprep.mubr.msk.f32.mxu0 %vm637_vm0, %v410_v23 }
  0xe4   : > { %1691 = vperm.xlu1 %2887, %v1593_v28  }
  0xe5   : > { %961 = vmatmul.mubr.f32.gmra.mrb[60].mxu0 %v409_v24 }
  0xe6   : > { %2418 = vmatprep.mubr.msk.f32.mxu0 %vm637_vm0, %v412_v26 }
  0xe7   : > { %v520_v15 = vpop.permute.xlu0 %519 }
  0xe8   : > { %1696 = vperm.xlu1 %2887, %v1594_v31  }
  0xe9   : > { %966 = vmatmul.mubr.f32.gmra.mrb[62].mxu0 %v411_v27 }
  0xea   : > { %2419 = vmatprep.mubr.msk.f32.mxu0 %vm637_vm0, %v414_v29 }
  0xeb   : > { %v530_v24 = vpop.permute.xlu0 %529 }
  0xec   : > { %1701 = vperm.xlu1 %2887, %v1595_v34   ;;  %v545_v34 = vpop.permute.xlu1 %544 }
  0xed   : > { %971 = vmatmul.mubr.f32.gmra.mrb[64].mxu0 %v413_v30 }
  0xee   : > { %2420 = vmatprep.mubr.msk.f32.mxu0 %vm637_vm0, %v416_v32 }
  0xf0   : > { %1706 = vperm.xlu1 %2887, %v1596_v37  }
  0xf1   : > { %976 = vmatmul.mubr.f32.gmra.mrb[66].mxu0 %v415_v33  ;;  %v540_v33 = vpop.permute.xlu0 %539 }
  0xf2   : > { %2421 = vmatprep.mubr.msk.f32.mxu0 %vm637_vm0, %v418_v35 }
  0xf4   : > { %1716 = vperm.xlu1 %2887, %v1598_v40  }
  0xf5   : > { %981 = vmatmul.mubr.f32.gmra.mrb[68].mxu0 %v417_v36 }
  0xf6   : > { %2422 = vmatprep.mubr.msk.f32.mxu0 %vm637_vm0, %v420_v38 }
  0xf9   : > { %986 = vmatmul.mubr.f32.gmra.mrb[70].mxu0 %v419_v39 }
 0x140   : > { %v3668_v41 = vpop.f32.mrb[0].mxu0 }
 0x141   : > { %v814_v42 = vpop.f32.mrb[1].mxu0 }
 0x144   : > { %v3670_v43 = vpop.f32.mrb[2].mxu0 }
 0x145   : > { %v819_v44 = vpop.f32.mrb[3].mxu0 }
 0x146   : > { %v550_v44 = vpop.permute.xlu0 %549 }
 0x148   : > { %v3672_v45 = vpop.f32.mrb[4].mxu0 }
 0x149   : > { %v824_v46 = vpop.f32.mrb[5].mxu0 }
 0x14a   : > { %v555_v46 = vpop.permute.xlu1 %554 }
 0x14c   : > { %v3674_v47 = vpop.f32.mrb[6].mxu0 }
 0x14d   : > { %v829_v48 = vpop.f32.mrb[7].mxu0 }
 0x150   : > { %v3680_v51 = vpop.f32.mrb[8].mxu0 }
 0x151   : > { %v834_v52 = vpop.f32.mrb[9].mxu0 }
 0x154   : > { %v3682_v53 = vpop.f32.mrb[10].mxu0 }
 0x155   : > { %v839_v55 = vpop.f32.mrb[11].mxu0 }
 0x158   : > { %v3688_v57 = vpop.f32.mrb[12].mxu0 }
 0x159   : > { %v844_v58 = vpop.f32.mrb[13].mxu0 }
 0x15c   : > { %v3694_v61 = vpop.f32.mrb[14].mxu0 }
 0x15d   : > { %v849_v62 = vpop.f32.mrb[15].mxu0 }
 0x160   : > { %v3696_v63 = vpop.f32.mrb[16].mxu0 }
 0x161   : > { %v854_v1 = vpop.f32.mrb[17].mxu0 }
 0x164   : > { %v3702_v3 = vpop.f32.mrb[18].mxu0 }
 0x165   : > { %v859_v4 = vpop.f32.mrb[19].mxu0 }
 0x168   : > { %v3708_v7 = vpop.f32.mrb[20].mxu0 }
 0x169   : > { %v864_v8 = vpop.f32.mrb[21].mxu0 }
 0x16a   : > { %v560_v8 = vpop.permute.xlu0 %559 }
 0x16c   : > { %v3712_v10 = vpop.f32.mrb[22].mxu0 }
 0x16d   : > { %v869_v11 = vpop.f32.mrb[23].mxu0 }
 0x16e   : > { %v565_v11 = vpop.permute.xlu1 %564 }
 0x170   : > { %v872_v13 = vpop.f32.mrb[24].mxu0 }
 0x171   : > { %v874_v14 = vpop.f32.mrb[25].mxu0  ;;  %v873_v18 = vadd.f32 %v872_v13, %v520_v15 }
 0x174   : > { %v877_v17 = vpop.f32.mrb[26].mxu0 }
 0x175   : > { %v878_v19 = vadd.f32 %v877_v17, %v525_v16  ;;  %v879_v20 = vpop.f32.mrb[27].mxu0 }
 0x176   : > { %v570_v20 = vpop.permute.xlu0 %569 }
 0x177   : > { %v2752_v21 = vpack.c.bf16 %v878_v19, %v873_v18 }
 0x178   : > { %v882_v22 = vpop.f32.mrb[28].mxu0 }
 0x179   : > { %v884_v23 = vpop.f32.mrb[29].mxu0  ;;  %2753 = vmatprep.subr.bf16.mxu1 %v2752_v21  ;;  %v883_v27 = vadd.f32 %v882_v22, %v530_v24 }
 0x17a   : > { %2755 = vmatpush3.bf16.msra.mxu1 %v2752_v21  ;;  %v575_v21 = vpop.permute.xlu1 %574 }
 0x17c   : > { %v887_v26 = vpop.f32.mrb[30].mxu0 }
 0x17d   : > { %v888_v28 = vadd.f32 %v887_v26, %v535_v25  ;;  %v889_v29 = vpop.f32.mrb[31].mxu0 }
 0x17f   : > { %v2756_v30 = vpack.c.bf16 %v888_v28, %v883_v27 }
 0x180   : > { %v892_v31 = vpop.f32.mrb[32].mxu0 }
 0x181   : > { %v894_v32 = vpop.f32.mrb[33].mxu0  ;;  %2757 = vmatprep.subr.bf16.mxu1 %v2756_v30  ;;  %v893_v36 = vadd.f32 %v892_v31, %v540_v33 }
 0x182   : > { %2759 = vmatpush3.bf16.msra.mxu1 %v2756_v30 }
 0x184   : > { %v897_v35 = vpop.f32.mrb[34].mxu0 }
 0x185   : > { %v898_v37 = vadd.f32 %v897_v35, %v545_v34  ;;  %v899_v38 = vpop.f32.mrb[35].mxu0 }
 0x187   : > { %v2760_v39 = vpack.c.bf16 %v898_v37, %v893_v36 }
 0x188   : > { %v902_v40 = vpop.f32.mrb[36].mxu0 }
 0x189   : > { %v904_v42 = vpop.f32.mrb[37].mxu0  ;;  %2761 = vmatprep.subr.bf16.mxu1 %v2760_v39  ;;  %v903_v52 = vadd.f32 %v902_v40, %v550_v44 }
 0x18a   : > { %2763 = vmatpush3.bf16.msra.mxu1 %v2760_v39 }
 0x18c   : > { %v907_v48 = vpop.f32.mrb[38].mxu0 }
 0x18d   : > { %v908_v55 = vadd.f32 %v907_v48, %v555_v46  ;;  %v909_v58 = vpop.f32.mrb[39].mxu0 }
 0x18f   : > { %v2764_v62 = vpack.c.bf16 %v908_v55, %v903_v52 }
 0x190   : > { %v912_v1 = vpop.f32.mrb[40].mxu0 }
 0x191   : > { %v914_v4 = vpop.f32.mrb[41].mxu0  ;;  %2765 = vmatprep.subr.bf16.mxu1 %v2764_v62  ;;  %v913_v14 = vadd.f32 %v912_v1, %v560_v8 }
 0x192   : > { %2767 = vmatpush3.bf16.msra.mxu1 %v2764_v62 }
 0x194   : > { %v917_v13 = vpop.f32.mrb[42].mxu0 }
 0x195   : > { %v918_v15 = vadd.f32 %v917_v13, %v565_v11  ;;  %v919_v16 = vpop.f32.mrb[43].mxu0 }
 0x197   : > { %v2768_v17 = vpack.c.bf16 %v918_v15, %v913_v14 }
 0x198   : > { %v922_v18 = vpop.f32.mrb[44].mxu0 }
 0x199   : > { %v924_v19 = vpop.f32.mrb[45].mxu0  ;;  %2769 = vmatprep.subr.bf16.mxu1 %v2768_v17  ;;  %v923_v23 = vadd.f32 %v922_v18, %v570_v20 }
 0x19a   : > { %2771 = vmatpush3.bf16.msra.mxu1 %v2768_v17 }
 0x19c   : > { %v927_v22 = vpop.f32.mrb[46].mxu0 }
 0x19d   : > { %v928_v24 = vadd.f32 %v927_v22, %v575_v21  ;;  %v929_v25 = vpop.f32.mrb[47].mxu0 }
 0x19f   : > { %v2772_v26 = vpack.c.bf16 %v928_v24, %v923_v23 }
 0x1a0   : > { %v932_v27 = vpop.f32.mrb[48].mxu0 }
 0x1a1   : > { %v933_v28 = vadd.f32 %v932_v27, %v3676_v49  ;;  %v934_v29 = vpop.f32.mrb[49].mxu0  ;;  %2773 = vmatprep.subr.bf16.mxu1 %v2772_v26 }
 0x1a2   : > { %2775 = vmatpush3.bf16.msra.mxu1 %v2772_v26 }
 0x1a3   : > { %1063 = vxpose.xlu0.b32.start [1/12] (short) %v933_v28, 128  ;;  %v460_v28 = vpop.permute.xlu1 %459 }
 0x1a4   : > { %v937_v30 = vpop.f32.mrb[50].mxu0  ;;  %v813_v29 = vadd.f32 %v3668_v41, %v460_v28 }
 0x1a5   : > { %v938_v31 = vadd.f32 %v937_v30, %v3684_v54  ;;  %v939_v32 = vpop.f32.mrb[51].mxu0 }
 0x1a7   : > { %1064 = vxpose.xlu0.b32.cont [2/12] (short) %v938_v31, 128 }
 0x1a8   : > { %v942_v33 = vpop.f32.mrb[52].mxu0 }
 0x1a9   : > { %v943_v34 = vadd.f32 %v942_v33, %v3678_v50  ;;  %v944_v35 = vpop.f32.mrb[53].mxu0 }
 0x1ab   : > { %1065 = vxpose.xlu0.b32.cont [3/12] (short) %v943_v34, 128 }
 0x1ac   : > { %v947_v36 = vpop.f32.mrb[54].mxu0 }
 0x1ad   : > { %v948_v37 = vadd.f32 %v947_v36, %v3686_v56  ;;  %v949_v38 = vpop.f32.mrb[55].mxu0 }
 0x1af   : > { %1066 = vxpose.xlu0.b32.cont [4/12] (short) %v948_v37, 128 }
 0x1b0   : > { %v952_v49 = vpop.f32.mrb[56].mxu0 }
 0x1b1   : > { %v953_v39 = vadd.f32 %v952_v49, %v3690_v59  ;;  %v954_v40 = vpop.f32.mrb[57].mxu0 }
 0x1b3   : > { %1067 = vxpose.xlu0.b32.cont [5/12] (short) %v953_v39, 128 }
 0x1b4   : > { %v957_v42 = vpop.f32.mrb[58].mxu0 }
 0x1b5   : > { %v958_v54 = vadd.f32 %v957_v42, %v3692_v60  ;;  %v959_v44 = vpop.f32.mrb[59].mxu0 }
 0x1b7   : > { %1068 = vxpose.xlu0.b32.cont [6/12] (short) %v958_v54, 128 }
 0x1b8   : > { %v962_v46 = vpop.f32.mrb[60].mxu0 }
 0x1b9   : > { %v963_v50 = vadd.f32 %v962_v46, %v3698_v0  ;;  %v964_v48 = vpop.f32.mrb[61].mxu0 }
 0x1bb   : > { %1069 = vxpose.xlu0.b32.cont [7/12] (short) %v963_v50, 128 }
 0x1bc   : > { %v967_v52 = vpop.f32.mrb[62].mxu0 }
 0x1bd   : > { %v968_v56 = vadd.f32 %v967_v52, %v3700_v2  ;;  %v969_v55 = vpop.f32.mrb[63].mxu0 }
 0x1bf   : > { %1070 = vxpose.xlu0.b32.cont [8/12] (short) %v968_v56, 128 }
 0x1c0   : > { %v972_v58 = vpop.f32.mrb[64].mxu0 }
 0x1c1   : > { %v973_v59 = vadd.f32 %v972_v58, %v3704_v5  ;;  %v974_v62 = vpop.f32.mrb[65].mxu0  ;;  %v1582_v5 = vld [vmem:[%s4130_s4 + $0x38] sm:$0xff] }
 0x1c3   : > { %1071 = vxpose.xlu0.b32.cont [9/12] (short) %v973_v59, 128 }
 0x1c4   : > { %v977_v1 = vpop.f32.mrb[66].mxu0 }
 0x1c5   : > { %v978_v60 = vadd.f32 %v977_v1, %v3706_v6  ;;  %v979_v4 = vpop.f32.mrb[67].mxu0  ;;  %v1597_v6 = vld [vmem:[%s4130_s4 + $0xb0] sm:$0xff] }
 0x1c7   : > { %1072 = vxpose.xlu0.b32.cont [10/12] (short) %v978_v60, 128 }
 0x1c8   : > { %v982_v8 = vpop.f32.mrb[68].mxu0 }
 0x1c9   : > { %v983_v0 = vadd.f32 %v982_v8, %v3710_v9  ;;  %v984_v11 = vpop.f32.mrb[69].mxu0 }
 0x1cb   : > { %1073 = vxpose.xlu0.b32.cont [11/12] (short) %v983_v0, 128 }
 0x1cc   : > { %v987_v13 = vpop.f32.mrb[70].mxu0 }
 0x1cd   : > { %v988_v2 = vadd.f32 %v987_v13, %v3714_v12  ;;  %v989_v14 = vpop.f32.mrb[71].mxu0 }
 0x1cf   : > { %1074 = vxpose.xlu0.b32.end [12/12] (short) %v988_v2, 128 }
 0x208   : > { %1636 = vperm.xlu0 %2886, %v1582_v5  }
 0x20c   : > { %1711 = vperm.xlu0 %2886, %v1597_v6  }
 0x223   : > { %v1079_v15 = vpop.trf.xlu0 }
 0x224   : > { %2582 = vmatprep.mubr.msk.f32.mxu1 %vm1095_vm1, %v1079_v15 }
 0x227   : > { %v1080_v9 = vpop.trf.xlu0 }
 0x228   : > { %2583 = vmatmul.mubr.msk.f32.vlgmr.msra.gmra.mrb[0].mxu1 %vm1095_vm1, %v1080_v9 }
 0x22b   : > { %v1081_v12 = vpop.trf.xlu0 }
 0x22c   : > { %2585 = vmatprep.mubr.msk.f32.mxu1 %vm1095_vm1, %v1081_v12 }
 0x22f   : > { %v1082_v16 = vpop.trf.xlu0 }
 0x230   : > { %2586 = vmatmul.mubr.msk.f32.gmra.mrb[2].mxu1 %vm1095_vm1, %v1082_v16 }
 0x233   : > { %v1083_v17 = vpop.trf.xlu0 }
 0x234   : > { %2588 = vmatprep.mubr.msk.f32.mxu1 %vm1095_vm1, %v1083_v17 }
 0x237   : > { %v1084_v18 = vpop.trf.xlu0 }
 0x238   : > { %2589 = vmatmul.mubr.msk.f32.gmra.mrb[4].mxu1 %vm1095_vm1, %v1084_v18 }
 0x23b   : > { %v1085_v19 = vpop.trf.xlu0 }
 0x23c   : > { %2591 = vmatprep.mubr.msk.f32.mxu1 %vm1095_vm1, %v1085_v19 }
 0x23f   : > { %v1086_v20 = vpop.trf.xlu0 }
 0x240   : > { %2592 = vmatmul.mubr.msk.f32.gmra.mrb[6].mxu1 %vm1095_vm1, %v1086_v20 }
 0x243   : > { %v1087_v21 = vpop.trf.xlu0 }
 0x244   : > { %2594 = vmatprep.mubr.msk.f32.mxu1 %vm1095_vm1, %v1087_v21 }
 0x247   : > { %v1088_v22 = vpop.trf.xlu0 }
 0x248   : > { %2595 = vmatmul.mubr.msk.f32.gmra.mrb[8].mxu1 %vm1095_vm1, %v1088_v22 }
 0x24b   : > { %v1089_v23 = vpop.trf.xlu0 }
 0x24c   : > { %2597 = vmatprep.mubr.msk.f32.mxu1 %vm1095_vm1, %v1089_v23 }
 0x24f   : > { %v1090_v24 = vpop.trf.xlu0 }
 0x250   : > { %2598 = vmatmul.mubr.msk.f32.gmra.mrb[10].mxu1 %vm1095_vm1, %v1090_v24 }
 0x253   : > { %v1091_v25 = vpop.trf.xlu0 }
 0x254   : > { %2600 = vmatprep.mubr.msk.f32.mxu1 %vm1095_vm1, %v1091_v25 }
 0x257   : > { %v1092_v26 = vpop.trf.xlu0 }
 0x258   : > { %2601 = vmatmul.mubr.msk.f32.gmra.mrb[12].mxu1 %vm1095_vm1, %v1092_v26 }
 0x25b   : > { %v1093_v27 = vpop.trf.xlu0 }
 0x25c   : > { %2603 = vmatprep.mubr.msk.f32.mxu1 %vm1095_vm1, %v1093_v27 }
 0x25f   : > { %v1094_v30 = vpop.trf.xlu0 }
 0x260   : > { %2604 = vmatmul.mubr.msk.f32.gmra.mrb[14].mxu1 %vm1095_vm1, %v1094_v30 }
 0x261   : > { %2638 = vmatprep.mubr.f32.mxu1 %v813_v29 }
 0x2fb   : > { %v2584_v31 = vpop.f32.mrb[0].mxu1 }
 0x2fc   : > { %v1210_v32 = vpop.f32.mrb[1].mxu1 }
 0x303   : > { %v2587_v33 = vpop.f32.mrb[2].mxu1 }
 0x304   : > { %v1220_v34 = vpop.f32.mrb[3].mxu1 }
 0x30b   : > { %v2590_v35 = vpop.f32.mrb[4].mxu1 }
 0x30c   : > { %v1290_v36 = vmax.f32 %v2584_v31, %v2590_v35  ;;  %v1230_v37 = vpop.f32.mrb[5].mxu1 }
 0x30d   : > { %v1289_v38 = vmax.f32 %v1210_v32, %v1230_v37 }
 0x313   : > { %v2593_v49 = vpop.f32.mrb[6].mxu1 }
 0x314   : > { %v1292_v39 = vmax.f32 %v2587_v33, %v2593_v49  ;;  %v1240_v40 = vpop.f32.mrb[7].mxu1 }
 0x315   : > { %v1291_v42 = vmax.f32 %v1220_v34, %v1240_v40 }
 0x31b   : > { %v2596_v54 = vpop.f32.mrb[8].mxu1 }
 0x31c   : > { %v1294_v44 = vmax.f32 %v1290_v36, %v2596_v54  ;;  %v1250_v46 = vpop.f32.mrb[9].mxu1 }
 0x31d   : > { %v1293_v41 = vmax.f32 %v1289_v38, %v1250_v46 }
 0x323   : > { %v2599_v50 = vpop.f32.mrb[10].mxu1 }
 0x324   : > { %v1296_v48 = vmax.f32 %v1292_v39, %v2599_v50  ;;  %v1260_v52 = vpop.f32.mrb[11].mxu1 }
 0x325   : > { %v1295_v56 = vmax.f32 %v1291_v42, %v1260_v52 }
 0x32b   : > { %v2602_v55 = vpop.f32.mrb[12].mxu1 }
 0x32c   : > { %v1298_v58 = vmax.f32 %v1294_v44, %v2602_v55  ;;  %v1270_v59 = vpop.f32.mrb[13].mxu1 }
 0x32d   : > { %v1297_v62 = vmax.f32 %v1293_v41, %v1270_v59 }
 0x32f   : > { %v1301_v1 = vmax.f32 %v1297_v62, %v1298_v58 }
 0x333   : > { %v2605_v60 = vpop.f32.mrb[14].mxu1 }
 0x334   : > { %v1300_v4 = vmax.f32 %v1296_v48, %v2605_v60  ;;  %v1280_v8 = vpop.f32.mrb[15].mxu1 }
 0x335   : > { %v1299_v0 = vmax.f32 %v1295_v56, %v1280_v8 }
 0x337   : > { %v1302_v11 = vmax.f32 %v1299_v0, %v1300_v4 }
 0x339   : > { %v1303_v13 = vmax.f32 %v1301_v1, %v1302_v11 }
 0x33b   : > { %v1304_v2 = vrot.slane %v1303_v13, 4 }
 0x33d   : > { %v1305_v14 = vmax.f32 %v1303_v13, %v1304_v2 }
 0x33f   : > { %v1306_v5 = vrot.slane %v1305_v14, 2 }
 0x341   : > { %v1307_v6 = vmax.f32 %v1305_v14, %v1306_v5 }
 0x343   : > { %v1308_v15 = vrot.slane %v1307_v6, 1 }
 0x345   : > { %v1309_v9 = vmax.f32 %v1307_v6, %v1308_v15 }
 0x347   : > { %v1310_v12 = vsub.f32 %v1210_v32, %v1309_v9  ;;  %v1311_v16 = vsub.f32 %v2584_v31, %v1309_v9  ;;  %v1312_v17 = vsub.f32 %v1220_v34, %v1309_v9  ;;  %v1313_v18 = vsub.f32 %v2587_v33, %v1309_v9  ;;  %v3751_v34 = vpop.permute.xlu1 %464 }
 0x348   : > { %v1314_v19 = vsub.f32 %v1230_v37, %v1309_v9  ;;  %v1315_v20 = vsub.f32 %v2590_v35, %v1309_v9  ;;  %v1316_v21 = vsub.f32 %v1240_v40, %v1309_v9  ;;  %v1317_v22 = vsub.f32 %v2593_v49, %v1309_v9 }
 0x349   : > { %v1318_v23 = vsub.f32 %v1250_v46, %v1309_v9  ;;  %v1319_v24 = vsub.f32 %v2596_v54, %v1309_v9  ;;  %v1320_v25 = vsub.f32 %v1260_v52, %v1309_v9  ;;  %v1321_v26 = vsub.f32 %v2599_v50, %v1309_v9 }
 0x34a   : > { %v1322_v27 = vsub.f32 %v1270_v59, %v1309_v9  ;;  %v1323_v28 = vsub.f32 %v2602_v55, %v1309_v9  ;;  %v1324_v29 = vsub.f32 %v1280_v8, %v1309_v9  ;;  %v1326_v30 = vmul.f32 1.442695, %v1310_v12 }
 0x34b   : > { %v1328_v36 = vmul.f32 1.442695, %v1311_v16  ;;  %v1330_v38 = vmul.f32 1.442695, %v1312_v17  ;;  %v1332_v39 = vmul.f32 1.442695, %v1313_v18  ;;  %v1325_v42 = vsub.f32 %v2605_v60, %v1309_v9  ;;  %v3753_v46 = vpop.permute.xlu1 %469 }
 0x34c   : > { %2888 = vpow2.f32 %v1326_v30  ;;  %v1334_v31 = vmul.f32 1.442695, %v1314_v19  ;;  %v1336_v32 = vmul.f32 1.442695, %v1315_v20  ;;  %v1338_v33 = vmul.f32 1.442695, %v1316_v21 }
 0x34d   : > { %2890 = vpow2.f32 %v1328_v36  ;;  %v1340_v35 = vmul.f32 1.442695, %v1317_v22  ;;  %v1342_v37 = vmul.f32 1.442695, %v1318_v23  ;;  %v1344_v49 = vmul.f32 1.442695, %v1319_v24 }
 0x34e   : > { %2892 = vpow2.f32 %v1330_v38  ;;  %v1346_v40 = vmul.f32 1.442695, %v1320_v25  ;;  %v1348_v54 = vmul.f32 1.442695, %v1321_v26  ;;  %v1350_v44 = vmul.f32 1.442695, %v1322_v27 }
 0x34f   : > { %2894 = vpow2.f32 %v1332_v39  ;;  %v1352_v41 = vmul.f32 1.442695, %v1323_v28  ;;  %v1354_v48 = vmul.f32 1.442695, %v1324_v29  ;;  %v1356_v56 = vmul.f32 1.442695, %v1325_v42  ;;  %v475_v0 = vpop.permute.xlu1 %474 }
 0x350   : > { %2896 = vpow2.f32 %v1334_v31 }
 0x351   : > { %2898 = vpow2.f32 %v1336_v32 }
 0x352   : > { %2900 = vpow2.f32 %v1338_v33 }
 0x353   : > { %2902 = vpow2.f32 %v1340_v35  ;;  %v480_v19 = vpop.permute.xlu1 %479 }
 0x354   : > { %2904 = vpow2.f32 %v1342_v37 }
 0x355   : > { %2906 = vpow2.f32 %v1344_v49 }
 0x356   : > { %v2889_v50 = vpop.eup %2888  ;;  %2908 = vpow2.f32 %v1346_v40  ;;  %v818_v40 = vadd.f32 %v3670_v43, %v3751_v34 }
 0x357   : > { %v2891_v52 = vpop.eup %2890  ;;  %2910 = vpow2.f32 %v1348_v54  ;;  %v485_v30 = vpop.permute.xlu1 %484 }
 0x358   : > { %v2893_v55 = vpop.eup %2892  ;;  %2912 = vpow2.f32 %v1350_v44  ;;  %v1358_v58 = vadd.f32 %v2891_v52, %v2889_v50  ;;  %v2776_v59 = vpack.c.bf16 %v2891_v52, %v2889_v50 }
 0x359   : > { %v2895_v62 = vpop.eup %2894  ;;  %2914 = vpow2.f32 %v1352_v41  ;;  %v823_v41 = vadd.f32 %v3672_v45, %v3753_v46 }
 0x35a   : > { %v2897_v1 = vpop.eup %2896  ;;  %2916 = vpow2.f32 %v1354_v48  ;;  %v1359_v60 = vadd.f32 %v2893_v55, %v1358_v58  ;;  %2777 = vmatprep.subr.bf16.mxu1 %v2776_v59  ;;  %v2780_v4 = vpack.c.bf16 %v2895_v62, %v2893_v55  ;;  %v828_v48 = vadd.f32 %v3674_v47, %v475_v0 }
 0x35b   : > { %v2899_v8 = vpop.eup %2898  ;;  %2779 = vmatpush3.bf16.msra.mxu1 %v2776_v59  ;;  %2918 = vpow2.f32 %v1356_v56  ;;  %v490_v42 = vpop.permute.xlu1 %489  ;;  %v833_v56 = vadd.f32 %v3680_v51, %v480_v19  ;;  %v838_v59 = vadd.f32 %v3682_v53, %v485_v30 }
 0x35c   : > { %v2901_v11 = vpop.eup %2900  ;;  %v1360_v13 = vadd.f32 %v2895_v62, %v1359_v60  ;;  %2781 = vmatprep.subr.bf16.mxu1 %v2780_v4  ;;  %v2784_v2 = vpack.c.bf16 %v2899_v8, %v2897_v1  ;;  %v843_v34 = vadd.f32 %v3688_v57, %v490_v42  ;;  %v1551_v57 = vld [vmem:[%s4129_s3] sm:$0xff]  ;;  %v1552_v42 = vld [vmem:[%s4129_s3 + $0x8] sm:$0xff] }
 0x35d   : > { %v2903_v14 = vpop.eup %2902 }
 0x35e   : > { %v2905_v5 = vpop.eup %2904  ;;  %v1361_v6 = vadd.f32 %v2897_v1, %v1360_v13  ;;  %v2788_v15 = vpack.c.bf16 %v2903_v14, %v2901_v11 }
 0x35f   : > { %v2907_v9 = vpop.eup %2906  ;;  %2783 = vmatpush3.bf16.msra.mxu1 %v2780_v4  ;;  %v495_v35 = vpop.permute.xlu1 %494 }
 0x360   : > { %v2909_v12 = vpop.eup %2908  ;;  %v1362_v16 = vadd.f32 %v2899_v8, %v1361_v6  ;;  %2785 = vmatprep.subr.bf16.mxu1 %v2784_v2  ;;  %v2792_v17 = vpack.c.bf16 %v2907_v9, %v2905_v5  ;;  %v848_v45 = vadd.f32 %v3694_v61, %v495_v35  ;;  %v1556_v35 = vld [vmem:[%s4129_s3 + $0x28] sm:$0xff] }
 0x361   : > { %v2911_v18 = vpop.eup %2910 }
 0x362   : > { %v2913_v20 = vpop.eup %2912  ;;  %v1363_v21 = vadd.f32 %v2901_v11, %v1362_v16  ;;  %v2796_v22 = vpack.c.bf16 %v2911_v18, %v2909_v12 }
 0x363   : > { %v2915_v23 = vpop.eup %2914  ;;  %2787 = vmatpush3.bf16.msra.mxu1 %v2784_v2  ;;  %v500_v44 = vpop.permute.xlu1 %499 }
 0x364   : > { %v2917_v24 = vpop.eup %2916  ;;  %v1364_v25 = vadd.f32 %v2903_v14, %v1363_v21  ;;  %2789 = vmatprep.subr.bf16.mxu1 %v2788_v15  ;;  %v2800_v26 = vpack.c.bf16 %v2915_v23, %v2913_v20  ;;  %v853_v47 = vadd.f32 %v3696_v63, %v500_v44  ;;  %v1534_v63 = vlaneseq  ;;  %v1561_v44 = vld [vmem:[%s4129_s3 + $0x50] sm:$0xff] }
 0x365   : > { %v2919_v27 = vpop.eup %2918 }
 0x366   : > { %v1365_v28 = vadd.f32 %v2905_v5, %v1364_v25  ;;  %v2804_v29 = vpack.c.bf16 %v2919_v27, %v2917_v24  ;;  %v1535_v60 = vshrl.u32 %v1534_v63, 7 }
 0x367   : > { %2791 = vmatpush3.bf16.msra.mxu1 %v2788_v15  ;;  %v505_v58 = vpop.permute.xlu1 %504 }
 0x368   : > { %v1366_v36 = vadd.f32 %v2907_v9, %v1365_v28  ;;  %2793 = vmatprep.subr.bf16.mxu1 %v2792_v17  ;;  %v858_v51 = vadd.f32 %v3702_v3, %v505_v58  ;;  %v1536_v4 = vsub.s32 0, %v1535_v60  ;;  %v1568_v58 = vld [vmem:[%s4129_s3 + $0x88] sm:$0xff] }
 0x36a   : > { %v1367_v38 = vadd.f32 %v2909_v12, %v1366_v36 }
 0x36b   : > { %2795 = vmatpush3.bf16.msra.mxu1 %v2792_v17  ;;  %v510_v46 = vpop.permute.xlu1 %509 }
 0x36c   : > { %v1368_v39 = vadd.f32 %v2911_v18, %v1367_v38  ;;  %2797 = vmatprep.subr.bf16.mxu1 %v2796_v22  ;;  %v863_v62 = vadd.f32 %v3708_v7, %v510_v46  ;;  %v1573_v46 = vld [vmem:[%s4129_s3 + $0xb0] sm:$0xff] }
 0x36e   : > { %v1369_v31 = vadd.f32 %v2913_v20, %v1368_v39 }
 0x36f   : > { %2799 = vmatpush3.bf16.msra.mxu1 %v2796_v22  ;;  %v515_v1 = vpop.permute.xlu1 %514 }
 0x370   : > { %v1370_v32 = vadd.f32 %v2915_v23, %v1369_v31  ;;  %2801 = vmatprep.subr.bf16.mxu1 %v2800_v26  ;;  %v868_v53 = vadd.f32 %v3712_v10, %v515_v1  ;;  %v1553_v31 = vld [vmem:[%s4129_s3 + $0x10] sm:$0xff] }
 0x372   : > { %v1371_v33 = vadd.f32 %v2917_v24, %v1370_v32  ;;  %v1554_v32 = vld [vmem:[%s4129_s3 + $0x18] sm:$0xff] }
 0x373   : > { %2803 = vmatpush3.bf16.msra.mxu1 %v2800_v26 }
 0x374   : > { %v1372_v37 = vadd.f32 %v2919_v27, %v1371_v33  ;;  %2805 = vmatprep.subr.bf16.mxu1 %v2804_v29  ;;  %v1555_v33 = vld [vmem:[%s4129_s3 + $0x20] sm:$0xff] }
 0x376   : > { %v1373_v49 = vrot.slane %v1372_v37, 4 }
 0x377   : > { %2807 = vmatpush3.bf16.msra.mxu1 %v2804_v29 }
 0x378   : > { %v1374_v54 = vadd.f32 %v1373_v49, %v1372_v37  ;;  %v1557_v37 = vld [vmem:[%s4129_s3 + $0x30] sm:$0xff]  ;;  %v1558_v49 = vld [vmem:[%s4129_s3 + $0x38] sm:$0xff] }
 0x37a   : > { %v1375_v50 = vrot.slane %v1374_v54, 2  ;;  %2639 = vmatmul.mubr.f32.vlgmr.msra.gmra.mrb[16].mxu1 %v818_v40  ;;  %v1559_v40 = vld [vmem:[%s4129_s3 + $0x40] sm:$0xff] }
 0x37b   : > { %2641 = vmatprep.mubr.f32.mxu1 %v823_v41  ;;  %v1562_v41 = vld [vmem:[%s4129_s3 + $0x58] sm:$0xff] }
 0x37c   : > { %v1376_v52 = vadd.f32 %v1375_v50, %v1374_v54  ;;  %v1560_v54 = vld [vmem:[%s4129_s3 + $0x48] sm:$0xff]  ;;  %v1563_v50 = vld [vmem:[%s4129_s3 + $0x60] sm:$0xff] }
 0x37e   : > { %v1377_v55 = vrot.slane %v1376_v52, 1  ;;  %2642 = vmatmul.mubr.f32.gmra.mrb[18].mxu1 %v828_v48  ;;  %v1564_v48 = vld [vmem:[%s4129_s3 + $0x68] sm:$0xff] }
 0x37f   : > { %2644 = vmatprep.mubr.f32.mxu1 %v833_v56  ;;  %v1566_v56 = vld [vmem:[%s4129_s3 + $0x78] sm:$0xff] }
 0x380   : > { %v1378_v43 = vadd.f32 %v1377_v55, %v1376_v52  ;;  %v1565_v52 = vld [vmem:[%s4129_s3 + $0x70] sm:$0xff]  ;;  %v1567_v55 = vld [vmem:[%s4129_s3 + $0x80] sm:$0xff] }
 0x382   : > { %1379 = vst [vmem:[#allocation4] sm:$0x1] %v1378_v43  ;;  %2645 = vmatmul.mubr.f32.gmra.mrb[20].mxu1 %v838_v59  ;;  %v1569_v59 = vld [vmem:[%s4129_s3 + $0x90] sm:$0xff]  ;;  %v1570_v43 = vld [vmem:[%s4129_s3 + $0x98] sm:$0xff] }
 0x383   : > { %2647 = vmatprep.mubr.f32.mxu1 %v843_v34  ;;  %v1571_v34 = vld [vmem:[%s4129_s3 + $0xa0] sm:$0xff] }
 0x386   : > { %2648 = vmatmul.mubr.f32.gmra.mrb[22].mxu1 %v848_v45  ;;  %v1572_v45 = vld [vmem:[%s4129_s3 + $0xa8] sm:$0xff] }
 0x387   : > { %2650 = vmatprep.mubr.f32.mxu1 %v853_v47  ;;  %v1574_v47 = vld [vmem:[%s4129_s3 + $0xb8] sm:$0xff] }
 0x389   : > { %v1530_v61 = vld [vmem:[#allocation4] sm:$0x1] }
 0x38a   : > { %2651 = vmatmul.mubr.f32.gmra.mrb[24].mxu1 %v858_v51  ;;  %2920 = vrcp.f32 %v1530_v61  ;;  %v1602_v51 = vpop.permute.xlu1 %1601 }
 0x38b   : > { %2653 = vmatprep.mubr.f32.mxu1 %v863_v62 }
 0x38e   : > { %2654 = vmatmul.mubr.f32.gmra.mrb[26].mxu1 %v868_v53  ;;  %v1607_v62 = vpop.permute.xlu1 %1606 }
 0x38f   : > { %2680 = vmatprep.mubr.msk.f32.mxu1 %vm1095_vm1, %v1551_v57 }
 0x392   : > { %v1612_v1 = vpop.permute.xlu1 %1611 }
 0x394   : > { %v2921_v3 = vpop.eup %2920 }
 0x395   : > { %v1537_v8 = vrot.slane %v2921_v3, %v1536_v4 }
 0x396   : > { %v1617_v53 = vpop.permute.xlu1 %1616 }
 0x39a   : > { %v1622_v57 = vpop.permute.xlu1 %1621 }
 0x39e   : > { %v1627_v61 = vpop.permute.xlu1 %1626 }
 0x3a2   : > { %v1632_v63 = vpop.permute.xlu1 %1631 }
 0x3a6   : > { %v3864_v60 = vpop.permute.xlu1 %1641 }
 0x44d   : > { %v2640_v7 = vpop.f32.mrb[16].mxu1 }
 0x44e   : > { %v1540_v0 = vmul.f32 %v2640_v7, %v1537_v8  ;;  %v1446_v11 = vpop.f32.mrb[17].mxu1 }
 0x44f   : > { %v1539_v13 = vmul.f32 %v1537_v8, %v1446_v11 }
 0x451   : > { %v2808_v2 = vpack.c.bf16 %v1540_v0, %v1539_v13  ;;  %v2643_v10 = vpop.f32.mrb[18].mxu1  ;;  %v2922_v0 = vld [vmem:[%s3200_s19 + $0x8] sm:$0xff] }
 0x452   : > { %v1542_v14 = vmul.f32 %v2643_v10, %v1537_v8  ;;  %v1456_v5 = vpop.f32.mrb[19].mxu1 }
 0x453   : > { %v1541_v6 = vmul.f32 %v1537_v8, %v1456_v5  ;;  %2809 = vmatprep.subr.bf16.mxu1 %v2808_v2  ;;  %v1647_v5 = vpop.permute.xlu1 %1646 }
 0x454   : > { %2811 = vmatpush3.bf16.msra.mxu1 %v2808_v2  ;;  %v2923_v2 = vld [vmem:[%s3200_s19] sm:$0xff] }
 0x455   : > { %v2812_v15 = vpack.c.bf16 %v1542_v14, %v1541_v6  ;;  %v2646_v9 = vpop.f32.mrb[20].mxu1 }
 0x456   : > { %v1544_v12 = vmul.f32 %v2646_v9, %v1537_v8  ;;  %v1466_v16 = vpop.f32.mrb[21].mxu1 }
 0x457   : > { %v1543_v17 = vmul.f32 %v1537_v8, %v1466_v16  ;;  %2813 = vmatprep.subr.bf16.mxu1 %v2812_v15  ;;  %v2924_v16 = vld [vmem:[%s3200_s19 + $0x18] sm:$0xff] }
 0x458   : > { %2815 = vmatpush3.bf16.msra.mxu1 %v2812_v15 }
 0x459   : > { %v2816_v18 = vpack.c.bf16 %v1544_v12, %v1543_v17  ;;  %v2649_v19 = vpop.f32.mrb[22].mxu1 }
 0x45a   : > { %v1546_v20 = vmul.f32 %v2649_v19, %v1537_v8  ;;  %v1476_v21 = vpop.f32.mrb[23].mxu1 }
 0x45b   : > { %v1545_v22 = vmul.f32 %v1537_v8, %v1476_v21  ;;  %2817 = vmatprep.subr.bf16.mxu1 %v2816_v18  ;;  %v2925_v21 = vld [vmem:[%s3200_s19 + $0x10] sm:$0xff] }
 0x45c   : > { %2819 = vmatpush3.bf16.msra.mxu1 %v2816_v18  ;;  %v1652_v18 = vpop.permute.xlu1 %1651 }
 0x45d   : > { %v2820_v23 = vpack.c.bf16 %v1546_v20, %v1545_v22  ;;  %v2652_v24 = vpop.f32.mrb[24].mxu1 }
 0x45e   : > { %v1548_v25 = vmul.f32 %v2652_v24, %v1537_v8  ;;  %v1486_v26 = vpop.f32.mrb[25].mxu1 }
 0x45f   : > { %v1547_v27 = vmul.f32 %v1537_v8, %v1486_v26  ;;  %2821 = vmatprep.subr.bf16.mxu1 %v2820_v23 }
 0x460   : > { %2823 = vmatpush3.bf16.msra.mxu1 %v2820_v23  ;;  %v1657_v26 = vpop.permute.xlu1 %1656 }
 0x461   : > { %v2824_v28 = vpack.c.bf16 %v1548_v25, %v1547_v27  ;;  %v2655_v29 = vpop.f32.mrb[26].mxu1  ;;  %v2926_v27 = vld [vmem:[%s3200_s19 + $0x28] sm:$0xff] }
 0x462   : > { %v1550_v30 = vmul.f32 %v2655_v29, %v1537_v8  ;;  %v1496_v36 = vpop.f32.mrb[27].mxu1 }
 0x463   : > { %v1549_v38 = vmul.f32 %v1537_v8, %v1496_v36  ;;  %2825 = vmatprep.subr.bf16.mxu1 %v2824_v28 }
 0x464   : > { %2827 = vmatpush3.bf16.msra.mxu1 %v2824_v28 }
 0x465   : > { %v2828_v39 = vpack.c.bf16 %v1550_v30, %v1549_v38  ;;  %v1637_v38 = vpop.permute.xlu0 %1636 }
 0x467   : > { %2829 = vmatprep.subr.bf16.mxu1 %v2828_v39 }
 0x468   : > { %2831 = vmatpush3.bf16.msra.mxu1 %v2828_v39  ;;  %v2927_v39 = vld [vmem:[%s3200_s19 + $0x20] sm:$0xff] }
 0x46b   : > { %2681 = vmatmul.mubr.msk.f32.vlgmr.msra.gmra.mrb[28].mxu1 %vm1095_vm1, %v1552_v42 }
 0x46c   : > { %2683 = vmatprep.mubr.msk.f32.mxu1 %vm1095_vm1, %v1553_v31 }
 0x46f   : > { %2684 = vmatmul.mubr.msk.f32.gmra.mrb[30].mxu1 %vm1095_vm1, %v1554_v32  ;;  %v1662_v32 = vpop.permute.xlu1 %1661 }
 0x470   : > { %2686 = vmatprep.mubr.msk.f32.mxu1 %vm1095_vm1, %v1555_v33 }
 0x473   : > { %2687 = vmatmul.mubr.msk.f32.gmra.mrb[32].mxu1 %vm1095_vm1, %v1556_v35 }
 0x474   : > { %2689 = vmatprep.mubr.msk.f32.mxu1 %vm1095_vm1, %v1557_v37  ;;  %v2928_v37 = vld [vmem:[%s3200_s19 + $0x38] sm:$0xff] }
 0x477   : > { %2690 = vmatmul.mubr.msk.f32.gmra.mrb[34].mxu1 %vm1095_vm1, %v1558_v49 }
 0x478   : > { %2692 = vmatprep.mubr.msk.f32.mxu1 %vm1095_vm1, %v1559_v40 }
 0x47b   : > { %2693 = vmatmul.mubr.msk.f32.gmra.mrb[36].mxu1 %vm1095_vm1, %v1560_v54 }
 0x47c   : > { %2695 = vmatprep.mubr.msk.f32.mxu1 %vm1095_vm1, %v1561_v44 }
 0x47f   : > { %2696 = vmatmul.mubr.msk.f32.gmra.mrb[38].mxu1 %vm1095_vm1, %v1562_v41  ;;  %v1667_v41 = vpop.permute.xlu1 %1666 }
 0x480   : > { %2698 = vmatprep.mubr.msk.f32.mxu1 %vm1095_vm1, %v1563_v50  ;;  %v2929_v50 = vld [vmem:[%s3200_s19 + $0x30] sm:$0xff] }
 0x483   : > { %2699 = vmatmul.mubr.msk.f32.gmra.mrb[40].mxu1 %vm1095_vm1, %v1564_v48 }
 0x484   : > { %2701 = vmatprep.mubr.msk.f32.mxu1 %vm1095_vm1, %v1565_v52 }
 0x487   : > { %2702 = vmatmul.mubr.msk.f32.gmra.mrb[42].mxu1 %vm1095_vm1, %v1566_v56 }
 0x488   : > { %2704 = vmatprep.mubr.msk.f32.mxu1 %vm1095_vm1, %v1567_v55 }
 0x48b   : > { %2705 = vmatmul.mubr.msk.f32.gmra.mrb[44].mxu1 %vm1095_vm1, %v1568_v58  ;;  %v2930_v58 = vld [vmem:[%s3200_s19 + $0x48] sm:$0xff] }
 0x48c   : > { %2707 = vmatprep.mubr.msk.f32.mxu1 %vm1095_vm1, %v1569_v59 }
 0x48f   : > { %2708 = vmatmul.mubr.msk.f32.gmra.mrb[46].mxu1 %vm1095_vm1, %v1570_v43 }
 0x490   : > { %2710 = vmatprep.mubr.msk.f32.mxu1 %vm1095_vm1, %v1571_v34  ;;  %v1672_v34 = vpop.permute.xlu1 %1671 }
 0x493   : > { %2711 = vmatmul.mubr.msk.f32.gmra.mrb[48].mxu1 %vm1095_vm1, %v1572_v45 }
 0x494   : > { %2713 = vmatprep.mubr.msk.f32.mxu1 %vm1095_vm1, %v1573_v46 }
 0x497   : > { %2714 = vmatmul.mubr.msk.f32.gmra.mrb[50].mxu1 %vm1095_vm1, %v1574_v47  ;;  %v2931_v47 = vld [vmem:[%s3200_s19 + $0x40] sm:$0xff] }
 0x53e   : > { %v2682_v4 = vpop.f32.mrb[28].mxu1 }
 0x53f   : > { %v1863_v3 = vadd.f32 %v2682_v4, %v1607_v62  ;;  %v1857_v8 = vpop.f32.mrb[29].mxu1 }
 0x540   : > { %v1858_v7 = vadd.f32 %v1857_v8, %v1602_v51  ;;  %v2933_v8 = vld [vmem:[%s3200_s19 + $0x50] sm:$0xff] }
 0x541   : > { %v1977_v11 = vadd.f32 %v2922_v0, %v1863_v3 }
 0x542   : > { %v2685_v13 = vpop.f32.mrb[30].mxu1  ;;  %v1976_v10 = vadd.f32 %v2923_v2, %v1858_v7 }
 0x543   : > { %2002 = vadd.xlane.f32.xlu1 %v1977_v11  ;;  %v1867_v14 = vpop.f32.mrb[31].mxu1  ;;  %v1873_v6 = vadd.f32 %v2685_v13, %v1617_v53  ;;  %v2934_v13 = vld [vmem:[%s3200_s19 + $0x68] sm:$0xff] }
 0x544   : > { %2000 = vadd.xlane.f32.xlu0 %v1976_v10  ;;  %v1868_v12 = vadd.f32 %v1867_v14, %v1612_v1 }
 0x545   : > { %v1979_v17 = vadd.f32 %v2924_v16, %v1873_v6 }
 0x546   : > { %v2688_v15 = vpop.f32.mrb[32].mxu1  ;;  %v1978_v22 = vadd.f32 %v2925_v21, %v1868_v12 }
 0x547   : > { %2075 = vmax.xlane.f32.xlu1 %v1977_v11  ;;  %v1877_v9 = vpop.f32.mrb[33].mxu1  ;;  %v1883_v23 = vadd.f32 %v2688_v15, %v1627_v61  ;;  %v2932_v61 = vld [vmem:[%s3200_s19 + $0x58] sm:$0xff] }
 0x548   : > { %2073 = vmax.xlane.f32.xlu0 %v1976_v10  ;;  %v1878_v29 = vadd.f32 %v1877_v9, %v1622_v57  ;;  %v1677_v57 = vpop.permute.xlu1 %1676  ;;  %v2936_v9 = vld [vmem:[%s3200_s19 + $0x78] sm:$0xff] }
 0x549   : > { %v1981_v28 = vadd.f32 %v2926_v27, %v1883_v23 }
 0x54a   : > { %v2691_v19 = vpop.f32.mrb[34].mxu1  ;;  %v1980_v42 = vadd.f32 %v2927_v39, %v1878_v29  ;;  %v2940_v29 = vld [vmem:[%s3200_s19 + $0x98] sm:$0xff]  ;;  %v2941_v39 = vld [vmem:[%s3200_s19 + $0x90] sm:$0xff] }
 0x54b   : > { %2079 = vmax.xlane.f32.xlu1 %v1979_v17  ;;  %v1887_v20 = vpop.f32.mrb[35].mxu1  ;;  %v1893_v31 = vadd.f32 %v2691_v19, %v1637_v38 }
 0x54c   : > { %2006 = vadd.xlane.f32.xlu0 %v1979_v17  ;;  %v1888_v40 = vadd.f32 %v1887_v20, %v1632_v63  ;;  %v1682_v11 = vpop.permute.xlu1 %1681 }
 0x54d   : > { %v1983_v49 = vadd.f32 %v2928_v37, %v1893_v31  ;;  %v1712_v37 = vpop.permute.xlu0 %1711 }
 0x54e   : > { %v2694_v24 = vpop.f32.mrb[36].mxu1  ;;  %v1982_v48 = vadd.f32 %v2929_v50, %v1888_v40  ;;  %v2943_v40 = vld [vmem:[%s3200_s19 + $0xa0] sm:$0xff]  ;;  %v2944_v50 = vld [vmem:[%s3200_s19 + $0xb0] sm:$0xff] }
 0x54f   : > { %v1897_v25 = vpop.f32.mrb[37].mxu1  ;;  %2077 = vmax.xlane.f32.xlu1 %v1978_v22  ;;  %v1903_v52 = vadd.f32 %v2694_v24, %v1647_v5  ;;  %v2935_v5 = vld [vmem:[%s3200_s19 + $0x60] sm:$0xff] }
 0x550   : > { %2004 = vadd.xlane.f32.xlu0 %v1978_v22  ;;  %v1898_v43 = vadd.f32 %v1897_v25, %v3864_v60  ;;  %v1687_v14 = vpop.permute.xlu1 %1686  ;;  %v2938_v22 = vld [vmem:[%s3200_s19 + $0x88] sm:$0xff]  ;;  %v2939_v25 = vld [vmem:[%s3200_s19 + $0x80] sm:$0xff] }
 0x551   : > { %v1985_v59 = vadd.f32 %v2930_v58, %v1903_v52  ;;  %v2945_v52 = vld [vmem:[%s3200_s19 + $0xb8] sm:$0xff] }
 0x552   : > { %v2697_v30 = vpop.f32.mrb[38].mxu1  ;;  %v1984_v51 = vadd.f32 %v2931_v47, %v1898_v43 }
 0x553   : > { %v1907_v36 = vpop.f32.mrb[39].mxu1  ;;  %2083 = vmax.xlane.f32.xlu1 %v1981_v28  ;;  %v1913_v62 = vadd.f32 %v2697_v30, %v1657_v26 }
 0x554   : > { %2010 = vadd.xlane.f32.xlu0 %v1981_v28  ;;  %v1908_v4 = vadd.f32 %v1907_v36, %v1652_v18  ;;  %v1692_v17 = vpop.permute.xlu1 %1691  ;;  %v2937_v18 = vld [vmem:[%s3200_s19 + $0x70] sm:$0xff] }
 0x555   : > { %v1987_v63 = vadd.f32 %v2932_v61, %v1913_v62  ;;  %v2170_v61 = vld [vmem:[%s4132_s6 + $0x8] sm:$0xff] }
 0x556   : > { %v2700_v33 = vpop.f32.mrb[40].mxu1  ;;  %v1986_v7 = vadd.f32 %v2933_v8, %v1908_v4 }
 0x557   : > { %v1917_v35 = vpop.f32.mrb[41].mxu1  ;;  %2081 = vmax.xlane.f32.xlu1 %v1980_v42  ;;  %v1923_v0 = vadd.f32 %v2700_v33, %v1667_v41 }
 0x558   : > { %2008 = vadd.xlane.f32.xlu0 %v1980_v42  ;;  %v1918_v10 = vadd.f32 %v1917_v35, %v1662_v32  ;;  %v1697_v21 = vpop.permute.xlu1 %1696  ;;  %v2942_v32 = vld [vmem:[%s3200_s19 + $0xa8] sm:$0xff]  ;;  %s3049_s19 = smov [#allocation10]  }
 0x559   : > { %v1989_v2 = vadd.f32 %v2934_v13, %v1923_v0  ;;  %v2121_v0 = vld [vmem:[%s4131_s5] sm:$0xff]  ;;  %s2980_s7 = sshll.u32 %s3049_s19, 4  ;;  %s2981_s7 = int_to_ptr.vmem [resolvable:$false] %s2980_s7 }
 0x55a   : > { %v2703_v54 = vpop.f32.mrb[42].mxu1  ;;  %v1988_v6 = vadd.f32 %v2935_v5, %v1918_v10  ;;  %s2982_s16 = scalar_lea.vmem %s2981_s7, 32  ;;  %p2983_p8 = scmp.lt.s32.totalorder %s4079_s21, %s2981_s7 }
 0x55b   : > { %v1927_v44 = vpop.f32.mrb[43].mxu1  ;;  %2087 = vmax.xlane.f32.xlu1 %v1983_v49  ;;  %v1933_v15 = vadd.f32 %v2703_v54, %v1677_v57  ;;  %p2984_p10 = scmp.lt.s32.totalorder %s2982_s16, %s2976_s23 }
 0x55c   : > { %2014 = vadd.xlane.f32.xlu0 %v1983_v49  ;;  %v1928_v16 = vadd.f32 %v1927_v44, %v1672_v34  ;;  %v1702_v28 = vpop.permute.xlu1 %1701 }
 0x55d   : > { %v1991_v12 = vadd.f32 %v2936_v9, %v1933_v15  ;;  %p2985_p0 = por %p2984_p10, %p2983_p8 }
 0x55e   : > { %v2706_v56 = vpop.f32.mrb[44].mxu1  ;;  %v1990_v19 = vadd.f32 %v2937_v18, %v1928_v16  ;;  %v2124_v18 = vld [vmem:[%s4131_s5 + $0x18] sm:$0xff] }
 0x55f   : > { %v1937_v55 = vpop.f32.mrb[45].mxu1  ;;  %2085 = vmax.xlane.f32.xlu1 %v1982_v48  ;;  %v1943_v20 = vadd.f32 %v2706_v56, %v1687_v14  ;;  %v2171_v14 = vld [vmem:[%s4132_s6 + $0x10] sm:$0xff]  ;;  %p2986_p2 = pnand %p2985_p0, %p2979_p13 }
 0x560   : > { %2012 = vadd.xlane.f32.xlu0 %v1982_v48  ;;  %v1938_v24 = vadd.f32 %v1937_v55, %v1682_v11  ;;  %v1707_v38 = vpop.permute.xlu1 %1706  ;;  %v2123_v11 = vld [vmem:[%s4131_s5 + $0x10] sm:$0xff] }
 0x561   : > { %v1993_v23 = vadd.f32 %v2938_v22, %v1943_v20  ;;  %v2125_v22 = vld [vmem:[%s4131_s5 + $0x20] sm:$0xff] }
 0x562   : > { %v2709_v45 = vpop.f32.mrb[46].mxu1  ;;  %v1992_v26 = vadd.f32 %v2939_v25, %v1938_v24  ;;  %v2172_v24 = vld [vmem:[%s4132_s6 + $0x18] sm:$0xff] }
 0x563   : > { %v1947_v46 = vpop.f32.mrb[47].mxu1  ;;  %2091 = vmax.xlane.f32.xlu1 %v1985_v59  ;;  %v1953_v27 = vadd.f32 %v2709_v45, %v1697_v21 }
 0x564   : > { %2018 = vadd.xlane.f32.xlu0 %v1985_v59  ;;  %v1948_v36 = vadd.f32 %v1947_v46, %v1692_v17  ;;  %v1717_v49 = vpop.permute.xlu1 %1716 }
 0x565   : > { %v1995_v30 = vadd.f32 %v2940_v29, %v1953_v27  ;;  %v2173_v27 = vld [vmem:[%s4132_s6 + $0x20] sm:$0xff] }
 0x566   : > { %v2712_v1 = vpop.f32.mrb[48].mxu1  ;;  %v1994_v42 = vadd.f32 %v2941_v39, %v1948_v36 }
 0x567   : > { %v3877_v53 = vpop.f32.mrb[49].mxu1  ;;  %2089 = vmax.xlane.f32.xlu1 %v1984_v51  ;;  %v1963_v31 = vadd.f32 %v2712_v1, %v1707_v38 }
 0x568   : > { %2016 = vadd.xlane.f32.xlu0 %v1984_v51  ;;  %v1958_v35 = vadd.f32 %v3877_v53, %v1702_v28 }
 0x569   : > { %v1997_v33 = vadd.f32 %v2942_v32, %v1963_v31 }
 0x56a   : > { %v3880_v60 = vpop.f32.mrb[50].mxu1  ;;  %v1996_v54 = vadd.f32 %v2943_v40, %v1958_v35  ;;  %v2127_v40 = vld [vmem:[%s4131_s5 + $0x30] sm:$0xff] }
 0x56b   : > { %v3882_v3 = vpop.f32.mrb[51].mxu1  ;;  %2095 = vmax.xlane.f32.xlu1 %v1987_v63  ;;  %v1973_v41 = vadd.f32 %v3880_v60, %v1717_v49  ;;  %v2126_v49 = vld [vmem:[%s4131_s5 + $0x28] sm:$0xff] }
 0x56c   : > { %2022 = vadd.xlane.f32.xlu0 %v1987_v63  ;;  %v1968_v44 = vadd.f32 %v3882_v3, %v1712_v37  ;;  %v2169_v63 = vld [vmem:[%s4132_s6] sm:$0xff] }
 0x56d   : > { %v1999_v56 = vadd.f32 %v2945_v52, %v1973_v41 }
 0x56e   : > { %v1998_v48 = vadd.f32 %v2944_v50, %v1968_v44  ;;  %v2174_v50 = vld [vmem:[%s4132_s6 + $0x28] sm:$0xff] }
 0x56f   : > { %2093 = vmax.xlane.f32.xlu1 %v1986_v7 }
 0x570   : > { %2020 = vadd.xlane.f32.xlu0 %v1986_v7  ;;  %v2122_v7 = vld [vmem:[%s4131_s5 + $0x8] sm:$0xff] }
 0x573   : > { %2099 = vmax.xlane.f32.xlu1 %v1989_v2 }
 0x574   : > { %2026 = vadd.xlane.f32.xlu0 %v1989_v2 }
 0x577   : > { %2097 = vmax.xlane.f32.xlu1 %v1988_v6 }
 0x578   : > { %2024 = vadd.xlane.f32.xlu0 %v1988_v6 }
 0x57b   : > { %2103 = vmax.xlane.f32.xlu1 %v1991_v12 }
 0x57c   : > { %2030 = vadd.xlane.f32.xlu0 %v1991_v12 }
 0x57f   : > { %2101 = vmax.xlane.f32.xlu1 %v1990_v19 }
 0x580   : > { %2028 = vadd.xlane.f32.xlu0 %v1990_v19 }
 0x583   : > { %2107 = vmax.xlane.f32.xlu1 %v1993_v23 }
 0x584   : > { %2034 = vadd.xlane.f32.xlu0 %v1993_v23 }
 0x587   : > { %2105 = vmax.xlane.f32.xlu1 %v1992_v26 }
 0x588   : > { %2032 = vadd.xlane.f32.xlu0 %v1992_v26 }
 0x58b   : > { %2111 = vmax.xlane.f32.xlu1 %v1995_v30 }
 0x58c   : > { %2038 = vadd.xlane.f32.xlu0 %v1995_v30 }
 0x58f   : > { %2109 = vmax.xlane.f32.xlu1 %v1994_v42 }
 0x590   : > { %2036 = vadd.xlane.f32.xlu0 %v1994_v42 }
 0x593   : > { %2115 = vmax.xlane.f32.xlu1 %v1997_v33 }
 0x594   : > { %2042 = vadd.xlane.f32.xlu0 %v1997_v33 }
 0x597   : > { %2113 = vmax.xlane.f32.xlu1 %v1996_v54 }
 0x598   : > { %2040 = vadd.xlane.f32.xlu0 %v1996_v54 }
 0x59b   : > { %2117 = vmax.xlane.f32.xlu1 %v1998_v48 }
 0x59c   : > { %2046 = vadd.xlane.f32.xlu0 %v1999_v56 }
 0x5a0   : > { %2044 = vadd.xlane.f32.xlu0 %v1998_v48  ;;  %v2175_v48 = vld [vmem:[%s4132_s6 + $0x30] sm:$0xff] }
 0x5a4   : > { %2119 = vmax.xlane.f32.xlu0 %v1999_v56 }
 0x5d0   : > { %v2003_v55 = vpop.xlane.xlu1 %2002 }
 0x5d1   : > { %v2001_v58 = vpop.xlane.xlu0 %2000  ;;  %v2050_v60 = vmul.f32 0.0078125, %v2003_v55 }
 0x5d2   : > { %v2049_v3 = vmul.f32 0.0078125, %v2001_v58 }
 0x5d3   : > { %v2146_v6 = vmul.f32 %v2122_v7, %v2050_v60 }
 0x5d4   : > { %v2076_v59 = vpop.xlane.xlu1 %2075  ;;  %v2145_v15 = vmul.f32 %v2121_v0, %v2049_v3 }
 0x5d5   : > { %v2074_v43 = vpop.xlane.xlu0 %2073  ;;  %v2194_v13 = vmul.f32 %v2170_v61, %v2076_v59 }
 0x5d6   : > { %v2193_v2 = vmul.f32 %v2169_v63, %v2074_v43 }
 0x5d7   : > { %v2218_v16 = vadd.f32 %v2194_v13, %v2146_v6 }
 0x5d8   : > { %v2080_v34 = vpop.xlane.xlu1 %2079  ;;  %v2217_v17 = vadd.f32 %v2193_v2, %v2145_v15 }
 0x5d9   : > { %v2007_v45 = vpop.xlane.xlu0 %2006  ;;  %v2243_v28 = vsel %vm2241_vm2, %v2218_v16, 0.0  ;;  %v2196_v38 = vmul.f32 %v2172_v24, %v2080_v34  ;;  %v2131_v16 = vld [vmem:[%s4131_s5 + $0x50] sm:$0xff] }
 0x5da   : > { %v2052_v12 = vmul.f32 0.0078125, %v2007_v45  ;;  %v2242_v29 = vsel %vm2241_vm2, %v2217_v17, 0.0  ;;  %v2128_v45 = vld [vmem:[%s4131_s5 + $0x38] sm:$0xff] }
 0x5db   : > { %v2244_v35 = vadd.f32 %v2243_v28, %v2242_v29 }
 0x5dc   : > { %v2078_v46 = vpop.xlane.xlu1 %2077  ;;  %v2148_v26 = vmul.f32 %v2124_v18, %v2052_v12 }
 0x5dd   : > { %v2005_v47 = vpop.xlane.xlu0 %2004  ;;  %v2195_v19 = vmul.f32 %v2171_v14, %v2078_v46 }
 0x5de   : > { %v2051_v8 = vmul.f32 0.0078125, %v2005_v47  ;;  %v2220_v37 = vadd.f32 %v2196_v38, %v2148_v26 }
 0x5e0   : > { %v2084_v51 = vpop.xlane.xlu1 %2083  ;;  %v2147_v9 = vmul.f32 %v2123_v11, %v2051_v8  ;;  %v2247_v58 = vsel %vm2241_vm2, %v2220_v37, 0.0  ;;  %v2177_v8 = vld [vmem:[%s4132_s6 + $0x40] sm:$0xff] }
 0x5e1   : > { %v2011_v62 = vpop.xlane.xlu0 %2010  ;;  %v2198_v43 = vmul.f32 %v2174_v50, %v2084_v51  ;;  %v2176_v51 = vld [vmem:[%s4132_s6 + $0x38] sm:$0xff]  ;;  %v2181_v37 = vld [vmem:[%s4132_s6 + $0x60] sm:$0xff] }
 0x5e2   : > { %v2219_v25 = vadd.f32 %v2195_v19, %v2147_v9  ;;  %v2054_v31 = vmul.f32 0.0078125, %v2011_v62 }
 0x5e4   : > { %v2082_v1 = vpop.xlane.xlu1 %2081  ;;  %v2245_v42 = vsel %vm2241_vm2, %v2219_v25, 0.0  ;;  %v2150_v56 = vmul.f32 %v2126_v49, %v2054_v31  ;;  %v2133_v31 = vld [vmem:[%s4131_s5 + $0x60] sm:$0xff] }
 0x5e5   : > { %v2009_v53 = vpop.xlane.xlu0 %2008  ;;  %v2197_v32 = vmul.f32 %v2173_v27, %v2082_v1  ;;  %v2246_v41 = vadd.f32 %v2245_v42, %v2244_v35  ;;  %v2132_v42 = vld [vmem:[%s4131_s5 + $0x58] sm:$0xff] }
 0x5e6   : > { %v2053_v20 = vmul.f32 0.0078125, %v2009_v53  ;;  %v2129_v53 = vld [vmem:[%s4131_s5 + $0x40] sm:$0xff]  ;;  %v2222_v63 = vadd.f32 %v2198_v43, %v2150_v56  ;;  %v2134_v43 = vld [vmem:[%s4131_s5 + $0x68] sm:$0xff] }
 0x5e7   : > { %v2248_v1 = vadd.f32 %v2247_v58, %v2246_v41 }
 0x5e8   : > { %v3900_v57 = vpop.xlane.xlu1 %2087  ;;  %v2149_v30 = vmul.f32 %v2125_v22, %v2053_v20  ;;  %v2179_v22 = vld [vmem:[%s4132_s6 + $0x50] sm:$0xff] }
 0x5e9   : > { %v2015_v4 = vpop.xlane.xlu0 %2014  ;;  %v2200_v11 = vmul.f32 %v2176_v51, %v3900_v57  ;;  %v2178_v57 = vld [vmem:[%s4132_s6 + $0x48] sm:$0xff] }
 0x5ea   : > { %v2221_v54 = vadd.f32 %v2197_v32, %v2149_v30  ;;  %v2056_v59 = vmul.f32 0.0078125, %v2015_v4 }
 0x5ec   : > { %v2086_v10 = vpop.xlane.xlu1 %2085  ;;  %v2249_v34 = vsel %vm2241_vm2, %v2221_v54, 0.0  ;;  %v2152_v3 = vmul.f32 %v2128_v45, %v2056_v59 }
 0x5ed   : > { %v2013_v5 = vpop.xlane.xlu0 %2012  ;;  %v2199_v46 = vmul.f32 %v2175_v48, %v2086_v10  ;;  %v2250_v60 = vadd.f32 %v2249_v34, %v2248_v1  ;;  %v2251_v10 = vsel %vm2241_vm2, %v2222_v63, 0.0  ;;  %v2135_v34 = vld [vmem:[%s4131_s5 + $0x70] sm:$0xff] }
 0x5ee   : > { %v2055_v33 = vmul.f32 0.0078125, %v2013_v5  ;;  %v2130_v5 = vld [vmem:[%s4131_s5 + $0x48] sm:$0xff]  ;;  %v2224_v9 = vadd.f32 %v2200_v11, %v2152_v3  ;;  %v2183_v1 = vld [vmem:[%s4132_s6 + $0x70] sm:$0xff] }
 0x5ef   : > { %v2252_v12 = vadd.f32 %v2251_v10, %v2250_v60 }
 0x5f0   : > { %v3923_v21 = vpop.xlane.xlu1 %2091  ;;  %v2151_v55 = vmul.f32 %v2127_v40, %v2055_v33  ;;  %v2255_v25 = vsel %vm2241_vm2, %v2224_v9, 0.0 }
 0x5f1   : > { %v2019_v23 = vpop.xlane.xlu0 %2018  ;;  %v2202_v26 = vmul.f32 %v2178_v57, %v3923_v21  ;;  %v2180_v21 = vld [vmem:[%s4132_s6 + $0x58] sm:$0xff] }
 0x5f2   : > { %v2223_v4 = vadd.f32 %v2199_v46, %v2151_v55  ;;  %v2058_v13 = vmul.f32 0.0078125, %v2019_v23 }
 0x5f4   : > { %v2090_v36 = vpop.xlane.xlu1 %2089  ;;  %v2253_v14 = vsel %vm2241_vm2, %v2223_v4, 0.0  ;;  %v2154_v20 = vmul.f32 %v2130_v5, %v2058_v13  ;;  %v2184_v5 = vld [vmem:[%s4132_s6 + $0x78] sm:$0xff] }
 0x5f5   : > { %v2017_v39 = vpop.xlane.xlu0 %2016  ;;  %v2201_v6 = vmul.f32 %v2177_v8, %v2090_v36  ;;  %v2254_v19 = vadd.f32 %v2253_v14, %v2252_v12  ;;  %v2136_v8 = vld [vmem:[%s4131_s5 + $0x78] sm:$0xff]  ;;  %v2185_v12 = vld [vmem:[%s4132_s6 + $0x80] sm:$0xff] }
 0x5f6   : > { %v2057_v47 = vmul.f32 0.0078125, %v2017_v39  ;;  %v2226_v38 = vadd.f32 %v2202_v26, %v2154_v20 }
 0x5f7   : > { %v2256_v39 = vadd.f32 %v2255_v25, %v2254_v19 }
 0x5f8   : > { %v3943_v44 = vpop.xlane.xlu1 %2095  ;;  %v2153_v7 = vmul.f32 %v2129_v53, %v2057_v47  ;;  %v2259_v41 = vsel %vm2241_vm2, %v2226_v38, 0.0  ;;  %v2187_v38 = vld [vmem:[%s4132_s6 + $0x90] sm:$0xff] }
 0x5f9   : > { %v2023_v52 = vpop.xlane.xlu0 %2022  ;;  %v2204_v50 = vmul.f32 %v2180_v21, %v3943_v44  ;;  %v2182_v44 = vld [vmem:[%s4132_s6 + $0x68] sm:$0xff] }
 0x5fa   : > { %v2225_v17 = vadd.f32 %v2201_v6, %v2153_v7  ;;  %v2060_v28 = vmul.f32 0.0078125, %v2023_v52 }
 0x5fc   : > { %v2094_v62 = vpop.xlane.xlu1 %2093  ;;  %v2257_v27 = vsel %vm2241_vm2, %v2225_v17, 0.0  ;;  %v2156_v49 = vmul.f32 %v2132_v42, %v2060_v28 }
 0x5fd   : > { %v2021_v61 = vpop.xlane.xlu0 %2020  ;;  %v2203_v29 = vmul.f32 %v2179_v22, %v2094_v62  ;;  %v2258_v35 = vadd.f32 %v2257_v27, %v2256_v39  ;;  %v2186_v27 = vld [vmem:[%s4132_s6 + $0x88] sm:$0xff]  ;;  %v2139_v39 = vld [vmem:[%s4131_s5 + $0x90] sm:$0xff] }
 0x5fe   : > { %v2059_v15 = vmul.f32 0.0078125, %v2021_v61  ;;  %v2228_v45 = vadd.f32 %v2204_v50, %v2156_v49  ;;  %v2140_v50 = vld [vmem:[%s4131_s5 + $0x98] sm:$0xff] }
 0x5ff   : > { %v2260_v59 = vadd.f32 %v2259_v41, %v2258_v35 }
 0x600   : > { %v2100_v0 = vpop.xlane.xlu1 %2099  ;;  %v2155_v24 = vmul.f32 %v2131_v16, %v2059_v15  ;;  %v2263_v4 = vsel %vm2241_vm2, %v2228_v45, 0.0  ;;  %v2141_v45 = vld [vmem:[%s4131_s5 + $0xa0] sm:$0xff] }
 0x601   : > { %v2027_v2 = vpop.xlane.xlu0 %2026  ;;  %v2206_v60 = vmul.f32 %v2182_v44, %v2100_v0 }
 0x602   : > { %v2227_v33 = vadd.f32 %v2203_v29, %v2155_v24  ;;  %v2062_v56 = vmul.f32 0.0078125, %v2027_v2  ;;  %v2137_v2 = vld [vmem:[%s4131_s5 + $0x80] sm:$0xff] }
 0x604   : > { %v2098_v18 = vpop.xlane.xlu1 %2097  ;;  %v2261_v52 = vsel %vm2241_vm2, %v2227_v33, 0.0  ;;  %v2158_v61 = vmul.f32 %v2134_v43, %v2062_v56  ;;  %v2189_v43 = vld [vmem:[%s4132_s6 + $0xa0] sm:$0xff] }
 0x605   : > { %v2025_v23 = vpop.xlane.xlu0 %2024  ;;  %v2205_v55 = vmul.f32 %v2181_v37, %v2098_v18  ;;  %v2262_v62 = vadd.f32 %v2261_v52, %v2260_v59 }
 0x606   : > { %v2061_v30 = vmul.f32 0.0078125, %v2025_v23  ;;  %v2230_v14 = vadd.f32 %v2206_v60, %v2158_v61  ;;  %v2138_v23 = vld [vmem:[%s4131_s5 + $0x88] sm:$0xff] }
 0x607   : > { %v2264_v13 = vadd.f32 %v2263_v4, %v2262_v62  ;;  %v2142_v61 = vld [vmem:[%s4131_s5 + $0xa8] sm:$0xff] }
 0x608   : > { %v2104_v36 = vpop.xlane.xlu1 %2103  ;;  %v2157_v40 = vmul.f32 %v2133_v31, %v2061_v30  ;;  %v2267_v20 = vsel %vm2241_vm2, %v2230_v14, 0.0 }
 0x609   : > { %v2031_v32 = vpop.xlane.xlu0 %2030  ;;  %v2208_v17 = vmul.f32 %v2184_v5, %v2104_v36  ;;  %v2191_v5 = vld [vmem:[%s4132_s6 + $0xb0] sm:$0xff] }
 0x60a   : > { %v2229_v46 = vadd.f32 %v2205_v55, %v2157_v40  ;;  %v2064_v51 = vmul.f32 0.0078125, %v2031_v32  ;;  %v2188_v55 = vld [vmem:[%s4132_s6 + $0x98] sm:$0xff] }
 0x60c   : > { %v2102_v54 = vpop.xlane.xlu1 %2101  ;;  %v2265_v3 = vsel %vm2241_vm2, %v2229_v46, 0.0  ;;  %v2160_v9 = vmul.f32 %v2136_v8, %v2064_v51 }
 0x60d   : > { %v2029_v48 = vpop.xlane.xlu0 %2028  ;;  %v2207_v7 = vmul.f32 %v2183_v1, %v2102_v54  ;;  %v2266_v15 = vadd.f32 %v2265_v3, %v2264_v13  ;;  %v2190_v3 = vld [vmem:[%s4132_s6 + $0xa8] sm:$0xff] }
 0x60e   : > { %v2063_v58 = vmul.f32 0.0078125, %v2029_v48  ;;  %v2232_v25 = vadd.f32 %v2208_v17, %v2160_v9  ;;  %v2144_v17 = vld [vmem:[%s4131_s5 + $0xb8] sm:$0xff] }
 0x60f   : > { %v2268_v26 = vadd.f32 %v2267_v20, %v2266_v15 }
 0x610   : > { %v2108_v47 = vpop.xlane.xlu1 %2107  ;;  %v2159_v63 = vmul.f32 %v2135_v34, %v2063_v58  ;;  %v2271_v32 = vsel %vm2241_vm2, %v2232_v25, 0.0 }
 0x611   : > { %v2035_v53 = vpop.xlane.xlu0 %2034  ;;  %v2210_v21 = vmul.f32 %v2186_v27, %v2108_v47 }
 0x612   : > { %v2231_v0 = vadd.f32 %v2207_v7, %v2159_v63  ;;  %v2066_v18 = vmul.f32 0.0078125, %v2035_v53 }
 0x614   : > { %v2106_v11 = vpop.xlane.xlu1 %2105  ;;  %v2269_v22 = vsel %vm2241_vm2, %v2231_v0, 0.0  ;;  %v2162_v36 = vmul.f32 %v2138_v23, %v2066_v18  ;;  %v2192_v18 = vld [vmem:[%s4132_s6 + $0xb8] sm:$0xff] }
 0x615   : > { %v2033_v10 = vpop.xlane.xlu0 %2032  ;;  %v2209_v24 = vmul.f32 %v2185_v12, %v2106_v11  ;;  %v2270_v30 = vadd.f32 %v2269_v22, %v2268_v26 }
 0x616   : > { %v2065_v6 = vmul.f32 0.0078125, %v2033_v10  ;;  %v2234_v54 = vadd.f32 %v2210_v21, %v2162_v36 }
 0x617   : > { %v2272_v41 = vadd.f32 %v2271_v32, %v2270_v30 }
 0x618   : > { %v2161_v16 = vmul.f32 %v2137_v2, %v2065_v6  ;;  %v2112_v57 = vpop.xlane.xlu1 %2111  ;;  %v2275_v59 = vsel %vm2241_vm2, %v2234_v54, 0.0  ;;  %v2143_v6 = vld [vmem:[%s4131_s5 + $0xb0] sm:$0xff] }
 0x619   : > { %v2039_v19 = vpop.xlane.xlu0 %2038  ;;  %v2212_v47 = vmul.f32 %v2188_v55, %v2112_v57 }
 0x61a   : > { %v2233_v28 = vadd.f32 %v2209_v24, %v2161_v16  ;;  %v2068_v35 = vmul.f32 0.0078125, %v2039_v19 }
 0x61c   : > { %v2110_v29 = vpop.xlane.xlu1 %2109  ;;  %v2273_v33 = vsel %vm2241_vm2, %v2233_v28, 0.0  ;;  %v2164_v58 = vmul.f32 %v2140_v50, %v2068_v35 }
 0x61d   : > { %v2037_v42 = vpop.xlane.xlu0 %2036  ;;  %v2211_v37 = vmul.f32 %v2187_v38, %v2110_v29  ;;  %v2274_v56 = vadd.f32 %v2273_v33, %v2272_v41  ;;  %v2295_v33 = vld [vmem:[#allocation6] sm:$0x1] }
 0x61e   : > { %v2067_v31 = vmul.f32 0.0078125, %v2037_v42  ;;  %v2236_v63 = vadd.f32 %v2212_v47, %v2164_v58 }
 0x61f   : > { %v2276_v53 = vadd.f32 %v2275_v59, %v2274_v56 }
 0x620   : > { %v2163_v49 = vmul.f32 %v2139_v39, %v2067_v31  ;;  %v2116_v40 = vpop.xlane.xlu1 %2115  ;;  %v2279_v13 = vsel %vm2241_vm2, %v2236_v63, 0.0 }
 0x621   : > { %v2043_v48 = vpop.xlane.xlu0 %2042  ;;  %v2214_v2 = vmul.f32 %v2190_v3, %v2116_v40 }
 0x622   : > { %v2235_v52 = vadd.f32 %v2211_v37, %v2163_v49  ;;  %v2070_v44 = vmul.f32 0.0078125, %v2043_v48 }
 0x624   : > { %v2114_v34 = vpop.xlane.xlu1 %2113  ;;  %v2277_v62 = vsel %vm2241_vm2, %v2235_v52, 0.0  ;;  %v2166_v7 = vmul.f32 %v2142_v61, %v2070_v44 }
 0x625   : > { %v2041_v46 = vpop.xlane.xlu0 %2040  ;;  %v2213_v51 = vmul.f32 %v2189_v43, %v2114_v34  ;;  %v2278_v60 = vadd.f32 %v2277_v62, %v2276_v53 }
 0x626   : > { %v2069_v1 = vmul.f32 0.0078125, %v2041_v46  ;;  %v2238_v9 = vadd.f32 %v2214_v2, %v2166_v7 }
 0x627   : > { %v2280_v14 = vadd.f32 %v2279_v13, %v2278_v60 }
 0x628   : > { %v2165_v4 = vmul.f32 %v2141_v45, %v2069_v1  ;;  %v2118_v0 = vpop.xlane.xlu1 %2117  ;;  %v2283_v23 = vsel %vm2241_vm2, %v2238_v9, 0.0 }
 0x629   : > { %v2047_v8 = vpop.xlane.xlu0 %2046  ;;  %v2215_v19 = vmul.f32 %v2191_v5, %v2118_v0 }
 0x62a   : > { %v2237_v11 = vadd.f32 %v2213_v51, %v2165_v4  ;;  %v2072_v12 = vmul.f32 0.0078125, %v2047_v8 }
 0x62c   : > { %v2281_v10 = vsel %vm2241_vm2, %v2237_v11, 0.0  ;;  %v2168_v24 = vmul.f32 %v2144_v17, %v2072_v12 }
 0x62d   : > { %v2045_v15 = vpop.xlane.xlu0 %2044  ;;  %v2282_v57 = vadd.f32 %v2281_v10, %v2280_v14 }
 0x62e   : > { %v2071_v16 = vmul.f32 0.0078125, %v2045_v15 }
 0x62f   : > { %v2284_v27 = vadd.f32 %v2283_v23, %v2282_v57 }
 0x630   : > { %v2167_v20 = vmul.f32 %v2143_v6, %v2071_v16 }
 0x631   : > { %v2120_v22 = vpop.xlane.xlu0 %2119 }
 0x632   : > { %v2239_v25 = vadd.f32 %v2215_v19, %v2167_v20  ;;  %v2216_v26 = vmul.f32 %v2192_v18, %v2120_v22 }
 0x634   : > { %v2285_v28 = vsel %vm2241_vm2, %v2239_v25, 0.0  ;;  %v2240_v29 = vadd.f32 %v2216_v26, %v2168_v24 }
 0x635   : > { %v2286_v30 = vadd.f32 %v2285_v28, %v2284_v27 }
 0x636   : > { %v2287_v36 = vsel %vm2241_vm2, %v2240_v29, 0.0 }
 0x637   : > { %v2288_v38 = vadd.f32 %v2287_v36, %v2286_v30 }
 0x639   : > { %v2289_v39 = vrot.slane %v2288_v38, 4 }
 0x63b   : > { %v2290_v42 = vadd.f32 %v2289_v39, %v2288_v38 }
 0x63d   : > { %v2291_v31 = vrot.slane %v2290_v42, 2 }
 0x63f   : > { %v2292_v32 = vadd.f32 %v2291_v31, %v2290_v42 }
 0x641   : > { %v2293_v21 = vrot.slane %v2292_v32, 1 }
 0x643   : > { %v2294_v35 = vadd.f32 %v2293_v21, %v2292_v32 }
 0x645   : > { %v2296_v37 = vadd.f32 %v2295_v33, %v2294_v35 }
 0x647   : > { %2299 = vperm.xlu1 %2887, %v2296_v37  }
 0x6c6   : > { %v2300_v49 = vpop.permute.xlu1 %2299 }
 0x6c7   : > { %2302 = vst [vmem:[%s324_s28] sm:$0x1] %v2300_v49 }
 0x6c8   : > { %2989 = shalt.err (!%p2986_p2)
}
 0x6c9   : > { %s2990_s20 = scalar_lea.hbm %s4084_s14, 16  ;;  %s2994_s27 = scalar_lea.hbm %s4134_s8, 32 }
 0x6ca   : > { %p2991_p4 = scmp.ne.s32.totalorder %s4084_s14, %s2990_s20  ;;  %p2995_p9 = scmp.lt.u32.totalorder %s4084_s14, %s4134_s8 }
 0x6cb   : > { %p2996_p1 = scmp.lt.u32.totalorder %s2994_s27, %s2990_s20  ;;  %p2998_p6 = scmp.lt.u32.totalorder %s2990_s20, %s4084_s14 }
 0x6cc   : > { %p2992_p5 = pnand %p2991_p4, %p4140_p11 }
 0x6cd   : > { %p2997_p3 = por %p2996_p1, %p2995_p9 }
 0x6ce   : > { %p2993_p7 = pneg %p2992_p5 }
 0x6cf   : > { %p2999_p12 = por %p2998_p6, %p2997_p3 }
 0x6d1   : > { %p3000_p13 = pnand %p2999_p12, %p2993_p7 }
 0x6d3   : > { %3003 = shalt.err (!%p3000_p13)
}
 0x6d4   : > { %2837 = dma.vmem_to_hbm [thread:$0]  (%p4140_p11), %s4079_s21, 16, %s4084_s14, %s2304_s22  }
 0x6d5 PF: > { %s2328_s13 = sand.u32 1, %s3030_s29   ;;  %p4141_p8 = scmp.ne.s32.totalorder %s4138_s18, 0 }
 0x6d6   : > { %p4142_p10 = scmp.ge.s32.totalorder %s3042_s10, 2  ;;  %s2329_s11 = scalar_lea.sflag [#allocation9], %s2328_s13 }
 0x6d8   : > { %p2844_p0 = pnand %p4142_p10, %p4141_p8 }
 0x6da   : > { %3025 = dma.done.wait (!%p2844_p0), %s2329_s11, 16  }
 0x6db   : > { %3027 = vsyncadd (!%p2844_p0), %s2329_s11, 4294967280  ;;  %p23_p2 = scmp.ge.s32.totalorder %s3123_s12, 4   ;;  %s4143_s29 = smov %s3034_s30 }
 0x6dc   : > { %s4144_s30 = smov %s3038_s9  ;;  %s4145_s9 = smov %s3135_s15 }
 0x6dd   : > { %s4146_s10 = smov %s3123_s12  ;;  %25 = sbr.rel (!%p23_p2) target bundleno = 8 (0x8), region = 97 }
 0x6e4   :  { %2333 = vsyncpa [#allocation8], 1 }
 0x6e5   :  { %2335 = vsyncpa [#allocation8 + $0x1], 1 }
 0x6e6   :  { %2336 = vsyncpa [#allocation9], 1 }
 0x6e7   :  { %2338 = vsyncpa [#allocation9 + $0x1], 1 }

</bundles_post_ra>
